<compile_context>
chip_gen: v6e
topology: v6e:2x2x1
jax: 0.10.0
libtpu: 0.0.40
codegen_flags: <defaults>
</compile_context>

<pallas_src>
import jax
import jax.numpy as jnp
from jax.experimental import pallas as pl
from jax.experimental.pallas import tpu as pltpu

VMEM = pl.BlockSpec(memory_space=pltpu.MemorySpace.VMEM)
BF16 = jnp.bfloat16


# ---------------------------------------------------------------------------
# Single fused forward kernel
# ---------------------------------------------------------------------------
def _patchgcn_kernel(
    x_ref, adj_ref, fcw_ref, fcb_ref,
    w1_ref, b1_ref, g1_ref, be1_ref, w2_ref, b2_ref, gout_ref, bout_ref,
    phiw_ref, phib_ref, wab_ref, bab_ref, wc_ref, bc_ref,
    wr_ref, br_ref, wk_ref, bk_ref,
    hz_ref,            # output: hazards (1, 1)
    xcat_ref,          # scratch: lane-dense (N, 4H) x_cat slab
):
    H = fcw_ref.shape[1]
    n_layers = w1_ref.shape[0]           # = 3 (num_layers=4 -> 3 DeepGCNLayers)
    eps = 1e-7

    adj = adj_ref[...]                   # (N, N) bf16 (small integer counts)

    # ---- self.fc: Linear(F, H) + ReLU  (Dropout = identity in eval) ----
    x = jnp.dot(x_ref[...].astype(BF16), fcw_ref[...],
                preferred_element_type=jnp.float32) + fcb_ref[...]
    x = jnp.maximum(x, 0.0)              # (N, H) f32
    xcat_ref[:, 0:H] = x

    # ---- 3x GENConv (softmax aggr, t=1) [+ DeepGCNLayer 'res' for 1:] ----
    for li in range(n_layers):
        # GENConv message: relu(x_j) + eps  (edge_attr is None)
        msg = jnp.maximum(x, 0.0) + eps                       # (N, H)
        # SoftmaxAggregation (t=1), per destination node, per feature.
        # Global per-feature max is safe: it cancels exactly in num/den.
        m = jnp.max(msg, axis=0, keepdims=True)
        e = jnp.exp(msg - m)
        # One fused adjacency matmul: adj @ [e*msg | e] -> (N, 2H)
        packed = jnp.concatenate([e * msg, e], axis=-1).astype(BF16)
        nd = jnp.dot(adj, packed, preferred_element_type=jnp.float32)
        num = nd[:, 0:H]
        den = nd[:, H:2 * H]
        has_nbr = den > 0.0
        inv_den = pl.reciprocal(jnp.where(has_nbr, den, 1.0), approx=True)
        aggr = jnp.where(has_nbr, num * inv_den, 0.0)

        h = aggr + x                                          # out = propagate + x

        # GENConv MLP: Linear(H, 2H) -> LayerNorm(2H) -> ReLU -> Linear(2H, H)
        h1 = jnp.dot(h.astype(BF16), w1_ref[li],
                     preferred_element_type=jnp.float32) + b1_ref[li]
        mu = jnp.mean(h1, axis=-1, keepdims=True)
        var = jnp.mean((h1 - mu) ** 2, axis=-1, keepdims=True)
        h1 = (h1 - mu) * jax.lax.rsqrt(var + 1e-5) * g1_ref[li] + be1_ref[li]
        h1 = jnp.maximum(h1, 0.0)
        conv_out = jnp.dot(h1.astype(BF16), w2_ref[li],
                           preferred_element_type=jnp.float32) + b2_ref[li]

        if li == 0:
            # x = self.layers[0].conv(x_, edge_index)   (conv only)
            x = conv_out
        else:
            # DeepGCNLayer 'res': h = conv(x); h = LN(h); h = relu(h); h = x + h
            mu2 = jnp.mean(conv_out, axis=-1, keepdims=True)
            var2 = jnp.mean((conv_out - mu2) ** 2, axis=-1, keepdims=True)
            hn = ((conv_out - mu2) * jax.lax.rsqrt(var2 + 1e-5)
                  * gout_ref[li] + bout_ref[li])
            x = x + jnp.maximum(hn, 0.0)
        xcat_ref[:, (li + 1) * H:(li + 2) * H] = x

    x_cat = xcat_ref[...]                                     # (N, 4H) f32
    H4 = x_cat.shape[-1]

    # ---- path_phi: Linear(4H, 4H) + ReLU ----
    h_path = jnp.dot(x_cat.astype(BF16), phiw_ref[...],
                     preferred_element_type=jnp.float32) + phib_ref[...]
    h_path = jnp.maximum(h_path, 0.0)                         # (N, 4H)

    # ---- gated attention: fused [wa | wb] matmul -> (N, 8H) ----
    ab = jnp.dot(h_path.astype(BF16), wab_ref[...],
                 preferred_element_type=jnp.float32) + bab_ref[...]
    a = jnp.tanh(ab[:, 0:H4])
    b = jax.nn.sigmoid(ab[:, H4:2 * H4])
    # attention_c (4H -> 1): VPU multiply + lane reduction (no 1-lane matmul)
    A = jnp.sum((a * b) * wc_ref[...], axis=-1, keepdims=True) + bc_ref[...]  # (N, 1)

    # softmax over nodes (A_path = A.T, softmax dim=1) + attention pooling
    Amax = jnp.max(A, axis=0, keepdims=True)
    eA = jnp.exp(A - Amax)
    s = eA * pl.reciprocal(jnp.sum(eA, axis=0, keepdims=True), approx=True)
    pooled = jnp.sum(s * h_path, axis=0, keepdims=True)       # (1, 4H)

    # ---- path_rho: Linear + ReLU ----
    hr = jnp.dot(pooled.astype(BF16), wr_ref[...],
                 preferred_element_type=jnp.float32) + br_ref[...]
    hr = jnp.maximum(hr, 0.0)

    # ---- classifier (4H -> 1) + sigmoid -> hazards ----
    logits = jnp.sum(hr * wk_ref[...], axis=-1, keepdims=True) + bk_ref[...]  # (1, 1)
    hz_ref[...] = jax.nn.sigmoid(logits)


# ---------------------------------------------------------------------------
# Wrapper: one pallas_call for the whole forward
# ---------------------------------------------------------------------------
def patchgcn_forward(x_in, adj, p):
    n = x_in.shape[0]
    h = p["fc_w"].shape[1]
    return pl.pallas_call(
        _patchgcn_kernel,
        out_shape=jax.ShapeDtypeStruct((1, 1), jnp.float32),
        in_specs=[VMEM] * 22,
        out_specs=VMEM,
        scratch_shapes=[pltpu.VMEM((n, 4 * h), jnp.float32)],
    )(
        x_in, adj.astype(BF16),
        p["fc_w"].astype(BF16), p["fc_b"],
        p["w1"].astype(BF16), p["b1"], p["g1"], p["be1"],
        p["w2"].astype(BF16), p["b2"], p["gout"], p["bout"],
        p["phi_w"].astype(BF16), p["phi_b"],
        p["wab"].astype(BF16), p["bab"], p["wc"], p["bc"],
        p["wr"].astype(BF16), p["br"], p["wk"], p["bk"],
    )
    # TODO(synk): Y_hat (topk) and S (cumprod) are computed in the torch
    # forward but only `hazards` is returned; they are omitted here.


# ---------------------------------------------------------------------------
# Deterministic parameter construction (synthetic, no checkpoint load)
# ---------------------------------------------------------------------------
def init_params(key, F, H):
    keys = iter(jax.random.split(key, 64))

    def lin(i, o):
        scale = 1.0 / (i ** 0.5)
        w = jax.random.uniform(next(keys), (i, o), jnp.float32, -scale, scale)
        b = jax.random.uniform(next(keys), (1, o), jnp.float32, -scale, scale)
        return w, b

    p = {}
    p["fc_w"], p["fc_b"] = lin(F, H)

    # 3 GCN layers (num_layers=4 -> 3 DeepGCNLayers), params stacked on axis 0
    w1s, b1s, w2s, b2s = [], [], [], []
    for _ in range(3):
        w1, b1 = lin(H, 2 * H)
        w2, b2 = lin(2 * H, H)
        w1s.append(w1); b1s.append(b1); w2s.append(w2); b2s.append(b2)
    p["w1"] = jnp.stack(w1s); p["b1"] = jnp.stack(b1s)
    p["w2"] = jnp.stack(w2s); p["b2"] = jnp.stack(b2s)
    p["g1"] = jnp.ones((3, 1, 2 * H), jnp.float32)
    p["be1"] = jnp.zeros((3, 1, 2 * H), jnp.float32)
    p["gout"] = jnp.ones((3, 1, H), jnp.float32)
    p["bout"] = jnp.zeros((3, 1, H), jnp.float32)

    H4 = 4 * H
    p["phi_w"], p["phi_b"] = lin(H4, H4)
    # fused attention gates [wa | wb] -> (4H, 8H)
    wa, ba = lin(H4, H4)
    wb, bb = lin(H4, H4)
    p["wab"] = jnp.concatenate([wa, wb], axis=1)
    p["bab"] = jnp.concatenate([ba, bb], axis=1)
    # 1-wide projections stored as (1, 4H) rows for VPU multiply + lane reduce
    wc, p["bc"] = lin(H4, 1)
    p["wc"] = wc.T
    p["wr"], p["br"] = lin(H4, H4)
    wk, p["bk"] = lin(H4, 1)
    p["wk"] = wk.T
    return p


if __name__ == "__main__":
    key = jax.random.PRNGKey(0)
    N, F, H = 16, 64, 32  # nodes, num_features, hidden_dim (small synthetic sizes)

    kx, kp = jax.random.split(key)
    x = jax.random.normal(kx, (N, F), jnp.float32)  # data.x

    # data.edge_index: bidirectional ring graph, row0 = src, row1 = dst
    idx = jnp.arange(N)
    src = jnp.concatenate([idx, (idx + 1) % N])
    dst = jnp.concatenate([(idx + 1) % N, idx])
    edge_index = jnp.stack([src, dst])              # (2, 2N)

    # dense adjacency adj[dst, src] (glue; handles multi-edges via add)
    adj = jnp.zeros((N, N), jnp.float32).at[edge_index[1], edge_index[0]].add(1.0)

    params = init_params(kp, F, H)

    hazards = jax.jit(patchgcn_forward)(x, adj, params)
    jax.block_until_ready(hazards)
    assert hazards.shape == (1, 1)
    assert bool(jnp.all(jnp.isfinite(hazards)))
    print("KERNEL_OK")
</pallas_src>

<mosaic_0001>
module attributes {stable_mosaic.version = 11 : i64} {
  func.func @_patchgcn_kernel(%arg0: memref<16x64xf32, #tpu.memory_space<vmem>>, %arg1: memref<16x16xbf16, #tpu.memory_space<vmem>>, %arg2: memref<64x32xbf16, #tpu.memory_space<vmem>>, %arg3: memref<1x32xf32, #tpu.memory_space<vmem>>, %arg4: memref<3x32x64xbf16, #tpu.memory_space<vmem>>, %arg5: memref<3x1x64xf32, #tpu.memory_space<vmem>>, %arg6: memref<3x1x64xf32, #tpu.memory_space<vmem>>, %arg7: memref<3x1x64xf32, #tpu.memory_space<vmem>>, %arg8: memref<3x64x32xbf16, #tpu.memory_space<vmem>>, %arg9: memref<3x1x32xf32, #tpu.memory_space<vmem>>, %arg10: memref<3x1x32xf32, #tpu.memory_space<vmem>>, %arg11: memref<3x1x32xf32, #tpu.memory_space<vmem>>, %arg12: memref<128x128xbf16, #tpu.memory_space<vmem>>, %arg13: memref<1x128xf32, #tpu.memory_space<vmem>>, %arg14: memref<128x256xbf16, #tpu.memory_space<vmem>>, %arg15: memref<1x256xf32, #tpu.memory_space<vmem>>, %arg16: memref<1x128xf32, #tpu.memory_space<vmem>>, %arg17: memref<1x1xf32, #tpu.memory_space<vmem>>, %arg18: memref<128x128xbf16, #tpu.memory_space<vmem>>, %arg19: memref<1x128xf32, #tpu.memory_space<vmem>>, %arg20: memref<1x128xf32, #tpu.memory_space<vmem>>, %arg21: memref<1x1xf32, #tpu.memory_space<vmem>>, %arg22: memref<1x1xf32, #tpu.memory_space<vmem>>, %arg23: memref<16x128xf32, #tpu.memory_space<vmem>>) attributes {dimension_semantics = [], scalar_prefetch = 0 : i64, scratch_operands = 1 : i64, tpu.core_type = #tpu.core_type<tc>} {
    %c0 = arith.constant 0 : index
    %c0_0 = arith.constant 0 : index
    %0 = vector.load %arg1[%c0, %c0_0] : memref<16x16xbf16, #tpu.memory_space<vmem>>, vector<16x16xbf16>
    %c0_1 = arith.constant 0 : index
    %c0_2 = arith.constant 0 : index
    %1 = vector.load %arg0[%c0_1, %c0_2] : memref<16x64xf32, #tpu.memory_space<vmem>>, vector<16x64xf32>
    %2 = arith.truncf %1 : vector<16x64xf32> to vector<16x64xbf16>
    %c0_3 = arith.constant 0 : index
    %c0_4 = arith.constant 0 : index
    %3 = vector.load %arg2[%c0_3, %c0_4] : memref<64x32xbf16, #tpu.memory_space<vmem>>, vector<64x32xbf16>
    %cst = arith.constant dense<0.000000e+00> : vector<16x32xf32>
    %4 = tpu.matmul %2, %3, %cst {dimension_numbers = #tpu.dot_dimension_numbers<[1], [0], [0], [1], [0, 0, 1, 1], [], []>} : vector<16x64xbf16>, vector<64x32xbf16>, vector<16x32xf32> -> vector<16x32xf32>
    %c0_5 = arith.constant 0 : index
    %c0_6 = arith.constant 0 : index
    %5 = vector.load %arg3[%c0_5, %c0_6] : memref<1x32xf32, #tpu.memory_space<vmem>>, vector<1x32xf32>
    %6 = vector.broadcast %5 : vector<1x32xf32> to vector<16x32xf32>
    %7 = arith.addf %4, %6 : vector<16x32xf32>
    %cst_7 = arith.constant 0.000000e+00 : f32
    %8 = vector.broadcast %cst_7 : f32 to vector<16x32xf32>
    %9 = arith.maximumf %7, %8 : vector<16x32xf32>
    %c0_8 = arith.constant 0 : index
    %c0_9 = arith.constant 0 : index
    %10 = vector.load %arg23[%c0_8, %c0_9] : memref<16x128xf32, #tpu.memory_space<vmem>>, vector<16x32xf32>
    tpu.vector_store %arg23[%c0_8, %c0_9], %9 {strides = array<i32>} : memref<16x128xf32, #tpu.memory_space<vmem>>, vector<16x32xf32>,
    %cst_10 = arith.constant 0.000000e+00 : f32
    %11 = vector.broadcast %cst_10 : f32 to vector<16x32xf32>
    %12 = arith.maximumf %9, %11 : vector<16x32xf32>
    %cst_11 = arith.constant 1.000000e-07 : f32
    %13 = vector.broadcast %cst_11 : f32 to vector<16x32xf32>
    %14 = arith.addf %12, %13 : vector<16x32xf32>
    %cst_12 = arith.constant dense<0xFF800000> : vector<32xf32>
    %15 = vector.multi_reduction <maximumf>, %14, %cst_12 [0] : vector<16x32xf32> to vector<32xf32>
    %16 = vector.shape_cast %15 : vector<32xf32> to vector<1x32xf32>
    %17 = vector.broadcast %16 : vector<1x32xf32> to vector<16x32xf32>
    %18 = arith.subf %14, %17 : vector<16x32xf32>
    %19 = math.exp %18 : vector<16x32xf32>
    %20 = arith.mulf %19, %14 : vector<16x32xf32>
    %21 = tpu.concatenate %20, %19 in 1 : vector<16x32xf32>, vector<16x32xf32> -> vector<16x64xf32>
    %22 = arith.truncf %21 : vector<16x64xf32> to vector<16x64xbf16>
    %cst_13 = arith.constant dense<0.000000e+00> : vector<16x64xf32>
    %23 = tpu.matmul %0, %22, %cst_13 {dimension_numbers = #tpu.dot_dimension_numbers<[1], [0], [0], [1], [0, 0, 1, 1], [], []>} : vector<16x16xbf16>, vector<16x64xbf16>, vector<16x64xf32> -> vector<16x64xf32>
    %24 = vector.extract_strided_slice %23 {offsets = [0, 0], sizes = [16, 32], strides = [1, 1]} : vector<16x64xf32> to vector<16x32xf32>
    %25 = vector.extract_strided_slice %23 {offsets = [0, 32], sizes = [16, 32], strides = [1, 1]} : vector<16x64xf32> to vector<16x32xf32>
    %cst_14 = arith.constant 0.000000e+00 : f32
    %26 = vector.broadcast %cst_14 : f32 to vector<16x32xf32>
    %27 = arith.cmpf ogt, %25, %26 : vector<16x32xf32>
    %cst_15 = arith.constant 1.000000e+00 : f32
    %28 = vector.broadcast %cst_15 : f32 to vector<16x32xf32>
    %29 = arith.select %27, %25, %28 : vector<16x32xi1>, vector<16x32xf32>
    %30 = tpu.reciprocal %29 {approx = true} : vector<16x32xf32> -> vector<16x32xf32>
    %31 = arith.mulf %24, %30 : vector<16x32xf32>
    %cst_16 = arith.constant 0.000000e+00 : f32
    %32 = vector.broadcast %cst_16 : f32 to vector<16x32xf32>
    %33 = arith.select %27, %31, %32 : vector<16x32xi1>, vector<16x32xf32>
    %34 = arith.addf %33, %9 : vector<16x32xf32>
    %35 = arith.truncf %34 : vector<16x32xf32> to vector<16x32xbf16>
    %c0_17 = arith.constant 0 : index
    %c0_18 = arith.constant 0 : index
    %c0_19 = arith.constant 0 : index
    %36 = vector.load %arg4[%c0_17, %c0_18, %c0_19] : memref<3x32x64xbf16, #tpu.memory_space<vmem>>, vector<1x32x64xbf16>
    %37 = vector.shape_cast %36 : vector<1x32x64xbf16> to vector<32x64xbf16>
    %cst_20 = arith.constant dense<0.000000e+00> : vector<16x64xf32>
    %38 = tpu.matmul %35, %37, %cst_20 {dimension_numbers = #tpu.dot_dimension_numbers<[1], [0], [0], [1], [0, 0, 1, 1], [], []>} : vector<16x32xbf16>, vector<32x64xbf16>, vector<16x64xf32> -> vector<16x64xf32>
    %c0_21 = arith.constant 0 : index
    %c0_22 = arith.constant 0 : index
    %c0_23 = arith.constant 0 : index
    %39 = vector.load %arg5[%c0_21, %c0_22, %c0_23] : memref<3x1x64xf32, #tpu.memory_space<vmem>>, vector<1x1x64xf32>
    %40 = vector.shape_cast %39 : vector<1x1x64xf32> to vector<1x64xf32>
    %41 = vector.broadcast %40 : vector<1x64xf32> to vector<16x64xf32>
    %42 = arith.addf %38, %41 : vector<16x64xf32>
    %cst_24 = arith.constant dense<0.000000e+00> : vector<16xf32>
    %43 = vector.multi_reduction <add>, %42, %cst_24 [1] : vector<16x64xf32> to vector<16xf32>
    %44 = vector.shape_cast %43 : vector<16xf32> to vector<16x1xf32>
    %cst_25 = arith.constant 6.400000e+01 : f32
    %45 = vector.broadcast %cst_25 : f32 to vector<16x1xf32>
    %46 = arith.divf %44, %45 : vector<16x1xf32>
    %47 = vector.broadcast %46 : vector<16x1xf32> to vector<16x64xf32>
    %48 = arith.subf %42, %47 : vector<16x64xf32>
    %49 = arith.mulf %48, %48 : vector<16x64xf32>
    %cst_26 = arith.constant dense<0.000000e+00> : vector<16xf32>
    %50 = vector.multi_reduction <add>, %49, %cst_26 [1] : vector<16x64xf32> to vector<16xf32>
    %51 = vector.shape_cast %50 : vector<16xf32> to vector<16x1xf32>
    %cst_27 = arith.constant 6.400000e+01 : f32
    %52 = vector.broadcast %cst_27 : f32 to vector<16x1xf32>
    %53 = arith.divf %51, %52 : vector<16x1xf32>
    %54 = vector.broadcast %46 : vector<16x1xf32> to vector<16x64xf32>
    %55 = arith.subf %42, %54 : vector<16x64xf32>
    %cst_28 = arith.constant 9.99999974E-6 : f32
    %56 = vector.broadcast %cst_28 : f32 to vector<16x1xf32>
    %57 = arith.addf %53, %56 : vector<16x1xf32>
    %58 = math.rsqrt %57 : vector<16x1xf32>
    %59 = vector.broadcast %58 : vector<16x1xf32> to vector<16x64xf32>
    %60 = arith.mulf %55, %59 : vector<16x64xf32>
    %c0_29 = arith.constant 0 : index
    %c0_30 = arith.constant 0 : index
    %c0_31 = arith.constant 0 : index
    %61 = vector.load %arg6[%c0_29, %c0_30, %c0_31] : memref<3x1x64xf32, #tpu.memory_space<vmem>>, vector<1x1x64xf32>
    %62 = vector.shape_cast %61 : vector<1x1x64xf32> to vector<1x64xf32>
    %63 = vector.broadcast %62 : vector<1x64xf32> to vector<16x64xf32>
    %64 = arith.mulf %60, %63 : vector<16x64xf32>
    %c0_32 = arith.constant 0 : index
    %c0_33 = arith.constant 0 : index
    %c0_34 = arith.constant 0 : index
    %65 = vector.load %arg7[%c0_32, %c0_33, %c0_34] : memref<3x1x64xf32, #tpu.memory_space<vmem>>, vector<1x1x64xf32>
    %66 = vector.shape_cast %65 : vector<1x1x64xf32> to vector<1x64xf32>
    %67 = vector.broadcast %66 : vector<1x64xf32> to vector<16x64xf32>
    %68 = arith.addf %64, %67 : vector<16x64xf32>
    %cst_35 = arith.constant 0.000000e+00 : f32
    %69 = vector.broadcast %cst_35 : f32 to vector<16x64xf32>
    %70 = arith.maximumf %68, %69 : vector<16x64xf32>
    %71 = arith.truncf %70 : vector<16x64xf32> to vector<16x64xbf16>
    %c0_36 = arith.constant 0 : index
    %c0_37 = arith.constant 0 : index
    %c0_38 = arith.constant 0 : index
    %72 = vector.load %arg8[%c0_36, %c0_37, %c0_38] : memref<3x64x32xbf16, #tpu.memory_space<vmem>>, vector<1x64x32xbf16>
    %73 = vector.shape_cast %72 : vector<1x64x32xbf16> to vector<64x32xbf16>
    %cst_39 = arith.constant dense<0.000000e+00> : vector<16x32xf32>
    %74 = tpu.matmul %71, %73, %cst_39 {dimension_numbers = #tpu.dot_dimension_numbers<[1], [0], [0], [1], [0, 0, 1, 1], [], []>} : vector<16x64xbf16>, vector<64x32xbf16>, vector<16x32xf32> -> vector<16x32xf32>
    %c0_40 = arith.constant 0 : index
    %c0_41 = arith.constant 0 : index
    %c0_42 = arith.constant 0 : index
    %75 = vector.load %arg9[%c0_40, %c0_41, %c0_42] : memref<3x1x32xf32, #tpu.memory_space<vmem>>, vector<1x1x32xf32>
    %76 = vector.shape_cast %75 : vector<1x1x32xf32> to vector<1x32xf32>
    %77 = vector.broadcast %76 : vector<1x32xf32> to vector<16x32xf32>
    %78 = arith.addf %74, %77 : vector<16x32xf32>
    %c0_43 = arith.constant 0 : index
    %c32 = arith.constant 32 : index
    %79 = vector.load %arg23[%c0_43, %c32] : memref<16x128xf32, #tpu.memory_space<vmem>>, vector<16x32xf32>
    tpu.vector_store %arg23[%c0_43, %c32], %78 {strides = array<i32>} : memref<16x128xf32, #tpu.memory_space<vmem>>, vector<16x32xf32>,
    %cst_44 = arith.constant 0.000000e+00 : f32
    %80 = vector.broadcast %cst_44 : f32 to vector<16x32xf32>
    %81 = arith.maximumf %78, %80 : vector<16x32xf32>
    %cst_45 = arith.constant 1.000000e-07 : f32
    %82 = vector.broadcast %cst_45 : f32 to vector<16x32xf32>
    %83 = arith.addf %81, %82 : vector<16x32xf32>
    %cst_46 = arith.constant dense<0xFF800000> : vector<32xf32>
    %84 = vector.multi_reduction <maximumf>, %83, %cst_46 [0] : vector<16x32xf32> to vector<32xf32>
    %85 = vector.shape_cast %84 : vector<32xf32> to vector<1x32xf32>
    %86 = vector.broadcast %85 : vector<1x32xf32> to vector<16x32xf32>
    %87 = arith.subf %83, %86 : vector<16x32xf32>
    %88 = math.exp %87 : vector<16x32xf32>
    %89 = arith.mulf %88, %83 : vector<16x32xf32>
    %90 = tpu.concatenate %89, %88 in 1 : vector<16x32xf32>, vector<16x32xf32> -> vector<16x64xf32>
    %91 = arith.truncf %90 : vector<16x64xf32> to vector<16x64xbf16>
    %cst_47 = arith.constant dense<0.000000e+00> : vector<16x64xf32>
    %92 = tpu.matmul %0, %91, %cst_47 {dimension_numbers = #tpu.dot_dimension_numbers<[1], [0], [0], [1], [0, 0, 1, 1], [], []>} : vector<16x16xbf16>, vector<16x64xbf16>, vector<16x64xf32> -> vector<16x64xf32>
    %93 = vector.extract_strided_slice %92 {offsets = [0, 0], sizes = [16, 32], strides = [1, 1]} : vector<16x64xf32> to vector<16x32xf32>
    %94 = vector.extract_strided_slice %92 {offsets = [0, 32], sizes = [16, 32], strides = [1, 1]} : vector<16x64xf32> to vector<16x32xf32>
    %cst_48 = arith.constant 0.000000e+00 : f32
    %95 = vector.broadcast %cst_48 : f32 to vector<16x32xf32>
    %96 = arith.cmpf ogt, %94, %95 : vector<16x32xf32>
    %cst_49 = arith.constant 1.000000e+00 : f32
    %97 = vector.broadcast %cst_49 : f32 to vector<16x32xf32>
    %98 = arith.select %96, %94, %97 : vector<16x32xi1>, vector<16x32xf32>
    %99 = tpu.reciprocal %98 {approx = true} : vector<16x32xf32> -> vector<16x32xf32>
    %100 = arith.mulf %93, %99 : vector<16x32xf32>
    %cst_50 = arith.constant 0.000000e+00 : f32
    %101 = vector.broadcast %cst_50 : f32 to vector<16x32xf32>
    %102 = arith.select %96, %100, %101 : vector<16x32xi1>, vector<16x32xf32>
    %103 = arith.addf %102, %78 : vector<16x32xf32>
    %104 = arith.truncf %103 : vector<16x32xf32> to vector<16x32xbf16>
    %c1 = arith.constant 1 : index
    %c0_51 = arith.constant 0 : index
    %c0_52 = arith.constant 0 : index
    %105 = vector.load %arg4[%c1, %c0_51, %c0_52] : memref<3x32x64xbf16, #tpu.memory_space<vmem>>, vector<1x32x64xbf16>
    %106 = vector.shape_cast %105 : vector<1x32x64xbf16> to vector<32x64xbf16>
    %cst_53 = arith.constant dense<0.000000e+00> : vector<16x64xf32>
    %107 = tpu.matmul %104, %106, %cst_53 {dimension_numbers = #tpu.dot_dimension_numbers<[1], [0], [0], [1], [0, 0, 1, 1], [], []>} : vector<16x32xbf16>, vector<32x64xbf16>, vector<16x64xf32> -> vector<16x64xf32>
    %c1_54 = arith.constant 1 : index
    %c0_55 = arith.constant 0 : index
    %c0_56 = arith.constant 0 : index
    %108 = vector.load %arg5[%c1_54, %c0_55, %c0_56] : memref<3x1x64xf32, #tpu.memory_space<vmem>>, vector<1x1x64xf32>
    %109 = vector.shape_cast %108 : vector<1x1x64xf32> to vector<1x64xf32>
    %110 = vector.broadcast %109 : vector<1x64xf32> to vector<16x64xf32>
    %111 = arith.addf %107, %110 : vector<16x64xf32>
    %cst_57 = arith.constant dense<0.000000e+00> : vector<16xf32>
    %112 = vector.multi_reduction <add>, %111, %cst_57 [1] : vector<16x64xf32> to vector<16xf32>
    %113 = vector.shape_cast %112 : vector<16xf32> to vector<16x1xf32>
    %cst_58 = arith.constant 6.400000e+01 : f32
    %114 = vector.broadcast %cst_58 : f32 to vector<16x1xf32>
    %115 = arith.divf %113, %114 : vector<16x1xf32>
    %116 = vector.broadcast %115 : vector<16x1xf32> to vector<16x64xf32>
    %117 = arith.subf %111, %116 : vector<16x64xf32>
    %118 = arith.mulf %117, %117 : vector<16x64xf32>
    %cst_59 = arith.constant dense<0.000000e+00> : vector<16xf32>
    %119 = vector.multi_reduction <add>, %118, %cst_59 [1] : vector<16x64xf32> to vector<16xf32>
    %120 = vector.shape_cast %119 : vector<16xf32> to vector<16x1xf32>
    %cst_60 = arith.constant 6.400000e+01 : f32
    %121 = vector.broadcast %cst_60 : f32 to vector<16x1xf32>
    %122 = arith.divf %120, %121 : vector<16x1xf32>
    %123 = vector.broadcast %115 : vector<16x1xf32> to vector<16x64xf32>
    %124 = arith.subf %111, %123 : vector<16x64xf32>
    %cst_61 = arith.constant 9.99999974E-6 : f32
    %125 = vector.broadcast %cst_61 : f32 to vector<16x1xf32>
    %126 = arith.addf %122, %125 : vector<16x1xf32>
    %127 = math.rsqrt %126 : vector<16x1xf32>
    %128 = vector.broadcast %127 : vector<16x1xf32> to vector<16x64xf32>
    %129 = arith.mulf %124, %128 : vector<16x64xf32>
    %c1_62 = arith.constant 1 : index
    %c0_63 = arith.constant 0 : index
    %c0_64 = arith.constant 0 : index
    %130 = vector.load %arg6[%c1_62, %c0_63, %c0_64] : memref<3x1x64xf32, #tpu.memory_space<vmem>>, vector<1x1x64xf32>
    %131 = vector.shape_cast %130 : vector<1x1x64xf32> to vector<1x64xf32>
    %132 = vector.broadcast %131 : vector<1x64xf32> to vector<16x64xf32>
    %133 = arith.mulf %129, %132 : vector<16x64xf32>
    %c1_65 = arith.constant 1 : index
    %c0_66 = arith.constant 0 : index
    %c0_67 = arith.constant 0 : index
    %134 = vector.load %arg7[%c1_65, %c0_66, %c0_67] : memref<3x1x64xf32, #tpu.memory_space<vmem>>, vector<1x1x64xf32>
    %135 = vector.shape_cast %134 : vector<1x1x64xf32> to vector<1x64xf32>
    %136 = vector.broadcast %135 : vector<1x64xf32> to vector<16x64xf32>
    %137 = arith.addf %133, %136 : vector<16x64xf32>
    %cst_68 = arith.constant 0.000000e+00 : f32
    %138 = vector.broadcast %cst_68 : f32 to vector<16x64xf32>
    %139 = arith.maximumf %137, %138 : vector<16x64xf32>
    %140 = arith.truncf %139 : vector<16x64xf32> to vector<16x64xbf16>
    %c1_69 = arith.constant 1 : index
    %c0_70 = arith.constant 0 : index
    %c0_71 = arith.constant 0 : index
    %141 = vector.load %arg8[%c1_69, %c0_70, %c0_71] : memref<3x64x32xbf16, #tpu.memory_space<vmem>>, vector<1x64x32xbf16>
    %142 = vector.shape_cast %141 : vector<1x64x32xbf16> to vector<64x32xbf16>
    %cst_72 = arith.constant dense<0.000000e+00> : vector<16x32xf32>
    %143 = tpu.matmul %140, %142, %cst_72 {dimension_numbers = #tpu.dot_dimension_numbers<[1], [0], [0], [1], [0, 0, 1, 1], [], []>} : vector<16x64xbf16>, vector<64x32xbf16>, vector<16x32xf32> -> vector<16x32xf32>
    %c1_73 = arith.constant 1 : index
    %c0_74 = arith.constant 0 : index
    %c0_75 = arith.constant 0 : index
    %144 = vector.load %arg9[%c1_73, %c0_74, %c0_75] : memref<3x1x32xf32, #tpu.memory_space<vmem>>, vector<1x1x32xf32>
    %145 = vector.shape_cast %144 : vector<1x1x32xf32> to vector<1x32xf32>
    %146 = vector.broadcast %145 : vector<1x32xf32> to vector<16x32xf32>
    %147 = arith.addf %143, %146 : vector<16x32xf32>
    %cst_76 = arith.constant dense<0.000000e+00> : vector<16xf32>
    %148 = vector.multi_reduction <add>, %147, %cst_76 [1] : vector<16x32xf32> to vector<16xf32>
    %149 = vector.shape_cast %148 : vector<16xf32> to vector<16x1xf32>
    %cst_77 = arith.constant 3.200000e+01 : f32
    %150 = vector.broadcast %cst_77 : f32 to vector<16x1xf32>
    %151 = arith.divf %149, %150 : vector<16x1xf32>
    %152 = vector.broadcast %151 : vector<16x1xf32> to vector<16x32xf32>
    %153 = arith.subf %147, %152 : vector<16x32xf32>
    %154 = arith.mulf %153, %153 : vector<16x32xf32>
    %cst_78 = arith.constant dense<0.000000e+00> : vector<16xf32>
    %155 = vector.multi_reduction <add>, %154, %cst_78 [1] : vector<16x32xf32> to vector<16xf32>
    %156 = vector.shape_cast %155 : vector<16xf32> to vector<16x1xf32>
    %cst_79 = arith.constant 3.200000e+01 : f32
    %157 = vector.broadcast %cst_79 : f32 to vector<16x1xf32>
    %158 = arith.divf %156, %157 : vector<16x1xf32>
    %159 = vector.broadcast %151 : vector<16x1xf32> to vector<16x32xf32>
    %160 = arith.subf %147, %159 : vector<16x32xf32>
    %cst_80 = arith.constant 9.99999974E-6 : f32
    %161 = vector.broadcast %cst_80 : f32 to vector<16x1xf32>
    %162 = arith.addf %158, %161 : vector<16x1xf32>
    %163 = math.rsqrt %162 : vector<16x1xf32>
    %164 = vector.broadcast %163 : vector<16x1xf32> to vector<16x32xf32>
    %165 = arith.mulf %160, %164 : vector<16x32xf32>
    %c1_81 = arith.constant 1 : index
    %c0_82 = arith.constant 0 : index
    %c0_83 = arith.constant 0 : index
    %166 = vector.load %arg10[%c1_81, %c0_82, %c0_83] : memref<3x1x32xf32, #tpu.memory_space<vmem>>, vector<1x1x32xf32>
    %167 = vector.shape_cast %166 : vector<1x1x32xf32> to vector<1x32xf32>
    %168 = vector.broadcast %167 : vector<1x32xf32> to vector<16x32xf32>
    %169 = arith.mulf %165, %168 : vector<16x32xf32>
    %c1_84 = arith.constant 1 : index
    %c0_85 = arith.constant 0 : index
    %c0_86 = arith.constant 0 : index
    %170 = vector.load %arg11[%c1_84, %c0_85, %c0_86] : memref<3x1x32xf32, #tpu.memory_space<vmem>>, vector<1x1x32xf32>
    %171 = vector.shape_cast %170 : vector<1x1x32xf32> to vector<1x32xf32>
    %172 = vector.broadcast %171 : vector<1x32xf32> to vector<16x32xf32>
    %173 = arith.addf %169, %172 : vector<16x32xf32>
    %cst_87 = arith.constant 0.000000e+00 : f32
    %174 = vector.broadcast %cst_87 : f32 to vector<16x32xf32>
    %175 = arith.maximumf %173, %174 : vector<16x32xf32>
    %176 = arith.addf %78, %175 : vector<16x32xf32>
    %c0_88 = arith.constant 0 : index
    %c64 = arith.constant 64 : index
    %177 = vector.load %arg23[%c0_88, %c64] : memref<16x128xf32, #tpu.memory_space<vmem>>, vector<16x32xf32>
    tpu.vector_store %arg23[%c0_88, %c64], %176 {strides = array<i32>} : memref<16x128xf32, #tpu.memory_space<vmem>>, vector<16x32xf32>,
    %cst_89 = arith.constant 0.000000e+00 : f32
    %178 = vector.broadcast %cst_89 : f32 to vector<16x32xf32>
    %179 = arith.maximumf %176, %178 : vector<16x32xf32>
    %cst_90 = arith.constant 1.000000e-07 : f32
    %180 = vector.broadcast %cst_90 : f32 to vector<16x32xf32>
    %181 = arith.addf %179, %180 : vector<16x32xf32>
    %cst_91 = arith.constant dense<0xFF800000> : vector<32xf32>
    %182 = vector.multi_reduction <maximumf>, %181, %cst_91 [0] : vector<16x32xf32> to vector<32xf32>
    %183 = vector.shape_cast %182 : vector<32xf32> to vector<1x32xf32>
    %184 = vector.broadcast %183 : vector<1x32xf32> to vector<16x32xf32>
    %185 = arith.subf %181, %184 : vector<16x32xf32>
    %186 = math.exp %185 : vector<16x32xf32>
    %187 = arith.mulf %186, %181 : vector<16x32xf32>
    %188 = tpu.concatenate %187, %186 in 1 : vector<16x32xf32>, vector<16x32xf32> -> vector<16x64xf32>
    %189 = arith.truncf %188 : vector<16x64xf32> to vector<16x64xbf16>
    %cst_92 = arith.constant dense<0.000000e+00> : vector<16x64xf32>
    %190 = tpu.matmul %0, %189, %cst_92 {dimension_numbers = #tpu.dot_dimension_numbers<[1], [0], [0], [1], [0, 0, 1, 1], [], []>} : vector<16x16xbf16>, vector<16x64xbf16>, vector<16x64xf32> -> vector<16x64xf32>
    %191 = vector.extract_strided_slice %190 {offsets = [0, 0], sizes = [16, 32], strides = [1, 1]} : vector<16x64xf32> to vector<16x32xf32>
    %192 = vector.extract_strided_slice %190 {offsets = [0, 32], sizes = [16, 32], strides = [1, 1]} : vector<16x64xf32> to vector<16x32xf32>
    %cst_93 = arith.constant 0.000000e+00 : f32
    %193 = vector.broadcast %cst_93 : f32 to vector<16x32xf32>
    %194 = arith.cmpf ogt, %192, %193 : vector<16x32xf32>
    %cst_94 = arith.constant 1.000000e+00 : f32
    %195 = vector.broadcast %cst_94 : f32 to vector<16x32xf32>
    %196 = arith.select %194, %192, %195 : vector<16x32xi1>, vector<16x32xf32>
    %197 = tpu.reciprocal %196 {approx = true} : vector<16x32xf32> -> vector<16x32xf32>
    %198 = arith.mulf %191, %197 : vector<16x32xf32>
    %cst_95 = arith.constant 0.000000e+00 : f32
    %199 = vector.broadcast %cst_95 : f32 to vector<16x32xf32>
    %200 = arith.select %194, %198, %199 : vector<16x32xi1>, vector<16x32xf32>
    %201 = arith.addf %200, %176 : vector<16x32xf32>
    %202 = arith.truncf %201 : vector<16x32xf32> to vector<16x32xbf16>
    %c2 = arith.constant 2 : index
    %c0_96 = arith.constant 0 : index
    %c0_97 = arith.constant 0 : index
    %203 = vector.load %arg4[%c2, %c0_96, %c0_97] : memref<3x32x64xbf16, #tpu.memory_space<vmem>>, vector<1x32x64xbf16>
    %204 = vector.shape_cast %203 : vector<1x32x64xbf16> to vector<32x64xbf16>
    %cst_98 = arith.constant dense<0.000000e+00> : vector<16x64xf32>
    %205 = tpu.matmul %202, %204, %cst_98 {dimension_numbers = #tpu.dot_dimension_numbers<[1], [0], [0], [1], [0, 0, 1, 1], [], []>} : vector<16x32xbf16>, vector<32x64xbf16>, vector<16x64xf32> -> vector<16x64xf32>
    %c2_99 = arith.constant 2 : index
    %c0_100 = arith.constant 0 : index
    %c0_101 = arith.constant 0 : index
    %206 = vector.load %arg5[%c2_99, %c0_100, %c0_101] : memref<3x1x64xf32, #tpu.memory_space<vmem>>, vector<1x1x64xf32>
    %207 = vector.shape_cast %206 : vector<1x1x64xf32> to vector<1x64xf32>
    %208 = vector.broadcast %207 : vector<1x64xf32> to vector<16x64xf32>
    %209 = arith.addf %205, %208 : vector<16x64xf32>
    %cst_102 = arith.constant dense<0.000000e+00> : vector<16xf32>
    %210 = vector.multi_reduction <add>, %209, %cst_102 [1] : vector<16x64xf32> to vector<16xf32>
    %211 = vector.shape_cast %210 : vector<16xf32> to vector<16x1xf32>
    %cst_103 = arith.constant 6.400000e+01 : f32
    %212 = vector.broadcast %cst_103 : f32 to vector<16x1xf32>
    %213 = arith.divf %211, %212 : vector<16x1xf32>
    %214 = vector.broadcast %213 : vector<16x1xf32> to vector<16x64xf32>
    %215 = arith.subf %209, %214 : vector<16x64xf32>
    %216 = arith.mulf %215, %215 : vector<16x64xf32>
    %cst_104 = arith.constant dense<0.000000e+00> : vector<16xf32>
    %217 = vector.multi_reduction <add>, %216, %cst_104 [1] : vector<16x64xf32> to vector<16xf32>
    %218 = vector.shape_cast %217 : vector<16xf32> to vector<16x1xf32>
    %cst_105 = arith.constant 6.400000e+01 : f32
    %219 = vector.broadcast %cst_105 : f32 to vector<16x1xf32>
    %220 = arith.divf %218, %219 : vector<16x1xf32>
    %221 = vector.broadcast %213 : vector<16x1xf32> to vector<16x64xf32>
    %222 = arith.subf %209, %221 : vector<16x64xf32>
    %cst_106 = arith.constant 9.99999974E-6 : f32
    %223 = vector.broadcast %cst_106 : f32 to vector<16x1xf32>
    %224 = arith.addf %220, %223 : vector<16x1xf32>
    %225 = math.rsqrt %224 : vector<16x1xf32>
    %226 = vector.broadcast %225 : vector<16x1xf32> to vector<16x64xf32>
    %227 = arith.mulf %222, %226 : vector<16x64xf32>
    %c2_107 = arith.constant 2 : index
    %c0_108 = arith.constant 0 : index
    %c0_109 = arith.constant 0 : index
    %228 = vector.load %arg6[%c2_107, %c0_108, %c0_109] : memref<3x1x64xf32, #tpu.memory_space<vmem>>, vector<1x1x64xf32>
    %229 = vector.shape_cast %228 : vector<1x1x64xf32> to vector<1x64xf32>
    %230 = vector.broadcast %229 : vector<1x64xf32> to vector<16x64xf32>
    %231 = arith.mulf %227, %230 : vector<16x64xf32>
    %c2_110 = arith.constant 2 : index
    %c0_111 = arith.constant 0 : index
    %c0_112 = arith.constant 0 : index
    %232 = vector.load %arg7[%c2_110, %c0_111, %c0_112] : memref<3x1x64xf32, #tpu.memory_space<vmem>>, vector<1x1x64xf32>
    %233 = vector.shape_cast %232 : vector<1x1x64xf32> to vector<1x64xf32>
    %234 = vector.broadcast %233 : vector<1x64xf32> to vector<16x64xf32>
    %235 = arith.addf %231, %234 : vector<16x64xf32>
    %cst_113 = arith.constant 0.000000e+00 : f32
    %236 = vector.broadcast %cst_113 : f32 to vector<16x64xf32>
    %237 = arith.maximumf %235, %236 : vector<16x64xf32>
    %238 = arith.truncf %237 : vector<16x64xf32> to vector<16x64xbf16>
    %c2_114 = arith.constant 2 : index
    %c0_115 = arith.constant 0 : index
    %c0_116 = arith.constant 0 : index
    %239 = vector.load %arg8[%c2_114, %c0_115, %c0_116] : memref<3x64x32xbf16, #tpu.memory_space<vmem>>, vector<1x64x32xbf16>
    %240 = vector.shape_cast %239 : vector<1x64x32xbf16> to vector<64x32xbf16>
    %cst_117 = arith.constant dense<0.000000e+00> : vector<16x32xf32>
    %241 = tpu.matmul %238, %240, %cst_117 {dimension_numbers = #tpu.dot_dimension_numbers<[1], [0], [0], [1], [0, 0, 1, 1], [], []>} : vector<16x64xbf16>, vector<64x32xbf16>, vector<16x32xf32> -> vector<16x32xf32>
    %c2_118 = arith.constant 2 : index
    %c0_119 = arith.constant 0 : index
    %c0_120 = arith.constant 0 : index
    %242 = vector.load %arg9[%c2_118, %c0_119, %c0_120] : memref<3x1x32xf32, #tpu.memory_space<vmem>>, vector<1x1x32xf32>
    %243 = vector.shape_cast %242 : vector<1x1x32xf32> to vector<1x32xf32>
    %244 = vector.broadcast %243 : vector<1x32xf32> to vector<16x32xf32>
    %245 = arith.addf %241, %244 : vector<16x32xf32>
    %cst_121 = arith.constant dense<0.000000e+00> : vector<16xf32>
    %246 = vector.multi_reduction <add>, %245, %cst_121 [1] : vector<16x32xf32> to vector<16xf32>
    %247 = vector.shape_cast %246 : vector<16xf32> to vector<16x1xf32>
    %cst_122 = arith.constant 3.200000e+01 : f32
    %248 = vector.broadcast %cst_122 : f32 to vector<16x1xf32>
    %249 = arith.divf %247, %248 : vector<16x1xf32>
    %250 = vector.broadcast %249 : vector<16x1xf32> to vector<16x32xf32>
    %251 = arith.subf %245, %250 : vector<16x32xf32>
    %252 = arith.mulf %251, %251 : vector<16x32xf32>
    %cst_123 = arith.constant dense<0.000000e+00> : vector<16xf32>
    %253 = vector.multi_reduction <add>, %252, %cst_123 [1] : vector<16x32xf32> to vector<16xf32>
    %254 = vector.shape_cast %253 : vector<16xf32> to vector<16x1xf32>
    %cst_124 = arith.constant 3.200000e+01 : f32
    %255 = vector.broadcast %cst_124 : f32 to vector<16x1xf32>
    %256 = arith.divf %254, %255 : vector<16x1xf32>
    %257 = vector.broadcast %249 : vector<16x1xf32> to vector<16x32xf32>
    %258 = arith.subf %245, %257 : vector<16x32xf32>
    %cst_125 = arith.constant 9.99999974E-6 : f32
    %259 = vector.broadcast %cst_125 : f32 to vector<16x1xf32>
    %260 = arith.addf %256, %259 : vector<16x1xf32>
    %261 = math.rsqrt %260 : vector<16x1xf32>
    %262 = vector.broadcast %261 : vector<16x1xf32> to vector<16x32xf32>
    %263 = arith.mulf %258, %262 : vector<16x32xf32>
    %c2_126 = arith.constant 2 : index
    %c0_127 = arith.constant 0 : index
    %c0_128 = arith.constant 0 : index
    %264 = vector.load %arg10[%c2_126, %c0_127, %c0_128] : memref<3x1x32xf32, #tpu.memory_space<vmem>>, vector<1x1x32xf32>
    %265 = vector.shape_cast %264 : vector<1x1x32xf32> to vector<1x32xf32>
    %266 = vector.broadcast %265 : vector<1x32xf32> to vector<16x32xf32>
    %267 = arith.mulf %263, %266 : vector<16x32xf32>
    %c2_129 = arith.constant 2 : index
    %c0_130 = arith.constant 0 : index
    %c0_131 = arith.constant 0 : index
    %268 = vector.load %arg11[%c2_129, %c0_130, %c0_131] : memref<3x1x32xf32, #tpu.memory_space<vmem>>, vector<1x1x32xf32>
    %269 = vector.shape_cast %268 : vector<1x1x32xf32> to vector<1x32xf32>
    %270 = vector.broadcast %269 : vector<1x32xf32> to vector<16x32xf32>
    %271 = arith.addf %267, %270 : vector<16x32xf32>
    %cst_132 = arith.constant 0.000000e+00 : f32
    %272 = vector.broadcast %cst_132 : f32 to vector<16x32xf32>
    %273 = arith.maximumf %271, %272 : vector<16x32xf32>
    %274 = arith.addf %176, %273 : vector<16x32xf32>
    %c0_133 = arith.constant 0 : index
    %c96 = arith.constant 96 : index
    %275 = vector.load %arg23[%c0_133, %c96] : memref<16x128xf32, #tpu.memory_space<vmem>>, vector<16x32xf32>
    tpu.vector_store %arg23[%c0_133, %c96], %274 {strides = array<i32>} : memref<16x128xf32, #tpu.memory_space<vmem>>, vector<16x32xf32>,
    %c0_134 = arith.constant 0 : index
    %c0_135 = arith.constant 0 : index
    %276 = vector.load %arg23[%c0_134, %c0_135] : memref<16x128xf32, #tpu.memory_space<vmem>>, vector<16x128xf32>
    %277 = arith.truncf %276 : vector<16x128xf32> to vector<16x128xbf16>
    %c0_136 = arith.constant 0 : index
    %c0_137 = arith.constant 0 : index
    %278 = vector.load %arg12[%c0_136, %c0_137] : memref<128x128xbf16, #tpu.memory_space<vmem>>, vector<128x128xbf16>
    %cst_138 = arith.constant dense<0.000000e+00> : vector<16x128xf32>
    %279 = tpu.matmul %277, %278, %cst_138 {dimension_numbers = #tpu.dot_dimension_numbers<[1], [0], [0], [1], [0, 0, 1, 1], [], []>} : vector<16x128xbf16>, vector<128x128xbf16>, vector<16x128xf32> -> vector<16x128xf32>
    %c0_139 = arith.constant 0 : index
    %c0_140 = arith.constant 0 : index
    %280 = vector.load %arg13[%c0_139, %c0_140] : memref<1x128xf32, #tpu.memory_space<vmem>>, vector<1x128xf32>
    %281 = vector.broadcast %280 : vector<1x128xf32> to vector<16x128xf32>
    %282 = arith.addf %279, %281 : vector<16x128xf32>
    %cst_141 = arith.constant 0.000000e+00 : f32
    %283 = vector.broadcast %cst_141 : f32 to vector<16x128xf32>
    %284 = arith.maximumf %282, %283 : vector<16x128xf32>
    %285 = arith.truncf %284 : vector<16x128xf32> to vector<16x128xbf16>
    %c0_142 = arith.constant 0 : index
    %c0_143 = arith.constant 0 : index
    %286 = vector.load %arg14[%c0_142, %c0_143] : memref<128x256xbf16, #tpu.memory_space<vmem>>, vector<128x256xbf16>
    %cst_144 = arith.constant dense<0.000000e+00> : vector<16x256xf32>
    %287 = tpu.matmul %285, %286, %cst_144 {dimension_numbers = #tpu.dot_dimension_numbers<[1], [0], [0], [1], [0, 0, 1, 1], [], []>} : vector<16x128xbf16>, vector<128x256xbf16>, vector<16x256xf32> -> vector<16x256xf32>
    %c0_145 = arith.constant 0 : index
    %c0_146 = arith.constant 0 : index
    %288 = vector.load %arg15[%c0_145, %c0_146] : memref<1x256xf32, #tpu.memory_space<vmem>>, vector<1x256xf32>
    %289 = vector.broadcast %288 : vector<1x256xf32> to vector<16x256xf32>
    %290 = arith.addf %287, %289 : vector<16x256xf32>
    %291 = vector.extract_strided_slice %290 {offsets = [0, 0], sizes = [16, 128], strides = [1, 1]} : vector<16x256xf32> to vector<16x128xf32>
    %292 = math.tanh %291 : vector<16x128xf32>
    %293 = vector.extract_strided_slice %290 {offsets = [0, 128], sizes = [16, 128], strides = [1, 1]} : vector<16x256xf32> to vector<16x128xf32>
    %294 = arith.negf %293 : vector<16x128xf32>
    %295 = math.exp %294 : vector<16x128xf32>
    %cst_147 = arith.constant 1.000000e+00 : f32
    %296 = vector.broadcast %cst_147 : f32 to vector<16x128xf32>
    %297 = arith.addf %296, %295 : vector<16x128xf32>
    %298 = arith.divf %296, %297 : vector<16x128xf32>
    %299 = arith.mulf %292, %298 : vector<16x128xf32>
    %c0_148 = arith.constant 0 : index
    %c0_149 = arith.constant 0 : index
    %300 = vector.load %arg16[%c0_148, %c0_149] : memref<1x128xf32, #tpu.memory_space<vmem>>, vector<1x128xf32>
    %301 = vector.broadcast %300 : vector<1x128xf32> to vector<16x128xf32>
    %302 = arith.mulf %299, %301 : vector<16x128xf32>
    %cst_150 = arith.constant dense<0.000000e+00> : vector<16xf32>
    %303 = vector.multi_reduction <add>, %302, %cst_150 [1] : vector<16x128xf32> to vector<16xf32>
    %304 = vector.shape_cast %303 : vector<16xf32> to vector<16x1xf32>
    %c0_151 = arith.constant 0 : index
    %c0_152 = arith.constant 0 : index
    %305 = vector.load %arg17[%c0_151, %c0_152] : memref<1x1xf32, #tpu.memory_space<vmem>>, vector<1x1xf32>
    %306 = vector.broadcast %305 : vector<1x1xf32> to vector<16x1xf32>
    %307 = arith.addf %304, %306 : vector<16x1xf32>
    %cst_153 = arith.constant dense<0xFF800000> : vector<1xf32>
    %308 = vector.multi_reduction <maximumf>, %307, %cst_153 [0] : vector<16x1xf32> to vector<1xf32>
    %309 = vector.shape_cast %308 : vector<1xf32> to vector<1x1xf32>
    %310 = vector.broadcast %309 : vector<1x1xf32> to vector<16x1xf32>
    %311 = arith.subf %307, %310 : vector<16x1xf32>
    %312 = math.exp %311 : vector<16x1xf32>
    %cst_154 = arith.constant dense<0.000000e+00> : vector<1xf32>
    %313 = vector.multi_reduction <add>, %312, %cst_154 [0] : vector<16x1xf32> to vector<1xf32>
    %314 = vector.shape_cast %313 : vector<1xf32> to vector<1x1xf32>
    %315 = tpu.reciprocal %314 {approx = true} : vector<1x1xf32> -> vector<1x1xf32>
    %316 = vector.broadcast %315 : vector<1x1xf32> to vector<16x1xf32>
    %317 = arith.mulf %312, %316 : vector<16x1xf32>
    %318 = vector.broadcast %317 : vector<16x1xf32> to vector<16x128xf32>
    %319 = arith.mulf %318, %284 : vector<16x128xf32>
    %cst_155 = arith.constant dense<0.000000e+00> : vector<128xf32>
    %320 = vector.multi_reduction <add>, %319, %cst_155 [0] : vector<16x128xf32> to vector<128xf32>
    %321 = vector.shape_cast %320 : vector<128xf32> to vector<1x128xf32>
    %322 = arith.truncf %321 : vector<1x128xf32> to vector<1x128xbf16>
    %c0_156 = arith.constant 0 : index
    %c0_157 = arith.constant 0 : index
    %323 = vector.load %arg18[%c0_156, %c0_157] : memref<128x128xbf16, #tpu.memory_space<vmem>>, vector<128x128xbf16>
    %cst_158 = arith.constant dense<0.000000e+00> : vector<1x128xf32>
    %324 = tpu.matmul %322, %323, %cst_158 {dimension_numbers = #tpu.dot_dimension_numbers<[1], [0], [0], [1], [0, 0, 1, 1], [], []>} : vector<1x128xbf16>, vector<128x128xbf16>, vector<1x128xf32> -> vector<1x128xf32>
    %c0_159 = arith.constant 0 : index
    %c0_160 = arith.constant 0 : index
    %325 = vector.load %arg19[%c0_159, %c0_160] : memref<1x128xf32, #tpu.memory_space<vmem>>, vector<1x128xf32>
    %326 = arith.addf %324, %325 : vector<1x128xf32>
    %cst_161 = arith.constant 0.000000e+00 : f32
    %327 = vector.broadcast %cst_161 : f32 to vector<1x128xf32>
    %328 = arith.maximumf %326, %327 : vector<1x128xf32>
    %c0_162 = arith.constant 0 : index
    %c0_163 = arith.constant 0 : index
    %329 = vector.load %arg20[%c0_162, %c0_163] : memref<1x128xf32, #tpu.memory_space<vmem>>, vector<1x128xf32>
    %330 = arith.mulf %328, %329 : vector<1x128xf32>
    %cst_164 = arith.constant dense<0.000000e+00> : vector<1xf32>
    %331 = vector.multi_reduction <add>, %330, %cst_164 [1] : vector<1x128xf32> to vector<1xf32>
    %332 = vector.shape_cast %331 : vector<1xf32> to vector<1x1xf32>
    %c0_165 = arith.constant 0 : index
    %c0_166 = arith.constant 0 : index
    %333 = vector.load %arg21[%c0_165, %c0_166] : memref<1x1xf32, #tpu.memory_space<vmem>>, vector<1x1xf32>
    %334 = arith.addf %332, %333 : vector<1x1xf32>
    %335 = arith.negf %334 : vector<1x1xf32>
    %336 = math.exp %335 : vector<1x1xf32>
    %cst_167 = arith.constant 1.000000e+00 : f32
    %337 = vector.broadcast %cst_167 : f32 to vector<1x1xf32>
    %338 = arith.addf %337, %336 : vector<1x1xf32>
    %339 = arith.divf %337, %338 : vector<1x1xf32>
    %c0_168 = arith.constant 0 : index
    %c0_169 = arith.constant 0 : index
    %340 = vector.load %arg22[%c0_168, %c0_169] : memref<1x1xf32, #tpu.memory_space<vmem>>, vector<1x1xf32>
    tpu.vector_store %arg22[%c0_168, %c0_169], %339 {strides = array<i32>} : memref<1x1xf32, #tpu.memory_space<vmem>>, vector<1x1xf32>,
    return
  }
}

</mosaic_0001>

<bundles_post_ra>
// kernel: patchgcn_forward.1
= control target key start
LH: loop header
LB: loop body
LE: loop exit
PB: predicated region body
PF: predicated region fallthrough
CT: control target
= control target key end

     0   :  { %s2790_s0 = inlined_call_operand.vmem [shape: f32[16,64], index: 0, kind: input, shape index: {}]   ;;  %s2791_s1 = inlined_call_operand.vmem [shape: bf16[16,16], index: 1, kind: input, shape index: {}]   ;;  %s2792_s2 = inlined_call_operand.vmem [shape: bf16[64,32], index: 2, kind: input, shape index: {}]   ;;  %s2793_s3 = inlined_call_operand.vmem [shape: f32[1,32], index: 3, kind: input, shape index: {}]   ;;  %s2794_s4 = inlined_call_operand.vmem [shape: bf16[3,32,64], index: 4, kind: input, shape index: {}]   ;;  %s2795_s5 = inlined_call_operand.vmem [shape: f32[3,1,64], index: 5, kind: input, shape index: {}]   ;;  %s2796_s6 = inlined_call_operand.vmem [shape: f32[3,1,64], index: 6, kind: input, shape index: {}]   ;;  %s2797_s7 = inlined_call_operand.vmem [shape: f32[3,1,64], index: 7, kind: input, shape index: {}]   ;;  %s2798_s8 = inlined_call_operand.vmem [shape: bf16[3,64,32], index: 8, kind: input, shape index: {}]   ;;  %s2799_s9 = inlined_call_operand.vmem [shape: f32[3,1,32], index: 9, kind: input, shape index: {}]   ;;  %s2800_s10 = inlined_call_operand.vmem [shape: f32[3,1,32], index: 10, kind: input, shape index: {}]   ;;  %s2801_s11 = inlined_call_operand.vmem [shape: f32[3,1,32], index: 11, kind: input, shape index: {}]   ;;  %s2802_s12 = inlined_call_operand.vmem [shape: bf16[128,128], index: 12, kind: input, shape index: {}]   ;;  %s2803_s13 = inlined_call_operand.vmem [shape: f32[1,128], index: 13, kind: input, shape index: {}]   ;;  %s2804_s14 = inlined_call_operand.vmem [shape: bf16[128,256], index: 14, kind: input, shape index: {}]   ;;  %s2805_s15 = inlined_call_operand.vmem [shape: f32[1,256], index: 15, kind: input, shape index: {}]   ;;  %s2806_s16 = inlined_call_operand.vmem [shape: f32[1,128], index: 16, kind: input, shape index: {}]   ;;  %s2807_s17 = inlined_call_operand.<no memory space> [shape: f32[1,1], index: 17, kind: input, shape index: {}]   ;;  %s2808_s18 = inlined_call_operand.vmem [shape: bf16[128,128], index: 18, kind: input, shape index: {}]   ;;  %s2809_s19 = inlined_call_operand.vmem [shape: f32[1,128], index: 19, kind: input, shape index: {}]   ;;  %s2810_s20 = inlined_call_operand.vmem [shape: f32[1,128], index: 20, kind: input, shape index: {}]   ;;  %s2811_s22 = inlined_call_operand.hbm [shape: f32[1,1], index: 22, kind: output, shape index: {}]   ;;  %s2812_s21 = inlined_call_operand.<no memory space> [shape: f32[1,1], index: 21, kind: input, shape index: {}]  }
   0x1   :  { %2818 = sst [smem:[#allocation8_spill]] %s2790_s0  ;;  %v27_v0 = vstv %s2807_s17  ;;  %v29_v1 = vstv %s2812_s21 }
   0x2   :  { %2819 = sst [smem:[#allocation9_spill]] %s2791_s1  ;;  %28 = vst [vmem:[#allocation3] sm:$0x1] %v27_v0  ;;  %30 = vst [vmem:[#allocation4] sm:$0x1] %v29_v1 }
   0x3   :  { %2820 = sst [smem:[#allocation10_spill]] %s2792_s2 }
   0x4   :  { %2821 = sst [smem:[#allocation11_spill]] %s2793_s3 }
   0x5   :  { %2822 = sst [smem:[#allocation12_spill]] %s2794_s4 }
   0x6   :  { %2823 = sst [smem:[#allocation13_spill]] %s2795_s5 }
   0x7   :  { %2824 = sst [smem:[#allocation14_spill]] %s2796_s6 }
   0x8   :  { %s2825_s23 = sld [smem:[#allocation10_spill]]  ;;  %v2220_v3 = vmov 0.0   ;;  %vm2221_vm0 = vmmov 0   ;;  %vm121_vm1 = vcmask 523264  }
   0x9   :  { %1915 = vmatprep.subr.bf16.mxu0 %v2220_v3  ;;  %1927 = vmatprep.subr.bf16.mxu1 %v2220_v3  ;;  %s2826_s2 = sld [smem:[#allocation8_spill]] }
   0xa   :  { %1923 = vmatprep.mubr.msk.bf16.mxu0 %vm2221_vm0, %v2220_v3  ;;  %1929 = vmatprep.mubr.msk.bf16.mxu1 %vm2221_vm0, %v2220_v3 }
   0xe   :  { %v2069_v2 = vld [vmem:[%s2825_s23 + $0x18] sm:$0xff]   ;;  %v2070_v4 = vld [vmem:[%s2825_s23 + $0x10] sm:$0xff]   ;;  %v2071_v5 = vld [vmem:[%s2825_s23 + $0x8] sm:$0xff]  }
   0xf   :  { %1916 = vmatpush3.bf16.msra.mxu0 %v2069_v2  ;;  %v2072_v6 = vld [vmem:[%s2825_s23] sm:$0xff]   ;;  %v80_v8 = vld [vmem:[%s2826_s2 + $0x8] sm:$0xff] }
  0x10   :  { %1917 = vmatprep.subr.bf16.mxu0 %v2220_v3  ;;  %v79_v7 = vld [vmem:[%s2826_s2] sm:$0xff] }
  0x11   :  { %v81_v9 = vpack.c.bf16 %v80_v8, %v79_v7 }
  0x13   :  { %1918 = vmatpush3.bf16.msra.mxu0 %v2070_v4 }
  0x14   :  { %1919 = vmatprep.subr.bf16.mxu0 %v2220_v3 }
  0x17   :  { %1920 = vmatpush3.bf16.msra.mxu0 %v2071_v5 }
  0x18   :  { %1921 = vmatprep.subr.bf16.mxu0 %v2220_v3 }
  0x1b   :  { %1922 = vmatpush3.bf16.msra.mxu0 %v2072_v6 }
  0x1c   :  { %1959 = vmatprep.subr.bf16.mxu0 %v2220_v3 }
  0x1e   :  { %1924 = vmatmul.mubr.msk.bf16.vlgmr.msra.gmra.mxu0 %vm121_vm1, %v81_v9 }
  0x1f   :  { %1963 = vmatprep.mubr.msk.bf16.mxu0 %vm2221_vm0, %v2220_v3 }
  0x20   :  { %31 = vsyncpa [#allocation6], 0  ;;  %s2827_s30 = sld [smem:[#allocation11_spill]]  ;;  %vm168_vm2 = vcmask 261120   ;;  %s2222_s4 = smov 32   ;;  %vm208_vm3 = vcmask 130048  }
  0x21   :  { %s2828_s1 = sld [smem:[#allocation9_spill]]  ;;  %s2223_s5 = smov 96   ;;  %vm499_vm8 = vcmask 523520   ;;  %vm869_vm11 = vcmask 785920   ;;  %vm1244_vm12 = vcmask 1048320   ;;  %vm1554_vm13 = vcmask 7168  }
  0x22   :  { %s2829_s24 = sld [smem:[#allocation12_spill]]  ;;  %vm1710_vm14 = vcmask 1040384   ;;  %vm1722_vm15 = vcmask 0  }
  0x23   :  { %s2830_s27 = sld [smem:[#allocation13_spill]] }
  0x24   :  { %s2831_s25 = sld [smem:[#allocation14_spill]] }
  0x26   :  { %v1738_v10 = vld [vmem:[%s2827_s30] ss:$0 sm:$0xff] }
  0x27   :  { %v2400_v47 = vld [vmem:[%s2828_s1] sm:$0xff]  }
  0x28   :  { %v2074_v58 = vld [vmem:[%s2829_s24 + $0x8] sm:$0xff]   ;;  %v2075_v60 = vld [vmem:[%s2829_s24] sm:$0xff]  }
  0x29   :  { %v1746_v9 = vld [vmem:[%s2830_s27] ss:$0 sm:$0xff] }
  0xde   :  { %v159_v11 = vpop.f32.mrf.mxu0 }
  0xdf   :  { %v160_v12 = vadd.f32 %v1738_v10, %v159_v11 }
  0xe0   :  { %v1925_v13 = vpop.f32.mrf.mxu0 }
  0xe1   :  { %v2382_v14 = vmax.f32 %v160_v12, 0.0 }
  0xe2   :  { %v162_v15 = vpop.f32.mrf.mxu0 }
  0xe3   :  { %v171_v16 = vmax.f32 %v2382_v14, 0.0  ;;  %169 = vst.msk [vmem:[#allocation2] sm:$0xff] %vm168_vm2, %v2382_v14  ;;  %v163_v17 = vadd.f32 %v1738_v10, %v162_v15 }
  0xe4   :  { %v1926_v18 = vpop.f32.mrf.mxu0 }
  0xe5   :  { %v2387_v19 = vmax.f32 %v163_v17, 0.0  ;;  %v173_v20 = vadd.f32 1e-07, %v171_v16 }
  0xe7   :  { %v172_v21 = vmax.f32 %v2387_v19, 0.0  ;;  %170 = vst.msk [vmem:[#allocation2 + $0x8] sm:$0xff] %vm168_vm2, %v2387_v19  ;;  %v175_v23 = vsel %vm168_vm2, %v173_v20, -inf }
  0xe9   :  { %v174_v22 = vadd.f32 1e-07, %v172_v21 }
  0xeb   :  { %v176_v24 = vsel %vm168_vm2, %v174_v22, -inf }
  0xec   :  { %v177_v25 = vmax.f32 %v175_v23, %v176_v24 }
  0xee   :  { %v178_v26 = vrot.slane %v177_v25, 4 }
  0xf0   :  { %v179_v27 = vmax.f32 %v177_v25, %v178_v26 }
  0xf2   :  { %v180_v28 = vrot.slane %v179_v27, 2 }
  0xf4   :  { %v181_v29 = vmax.f32 %v179_v27, %v180_v28  ;;  %v2076_v28 = vld [vmem:[%s2798_s8 + $0x18] sm:$0xff]  }
  0xf6   :  { %v182_v30 = vrot.slane %v181_v29, 1 }
  0xf8   :  { %v183_v31 = vmax.f32 %v181_v29, %v182_v30  ;;  %v2077_v29 = vld [vmem:[%s2798_s8 + $0x10] sm:$0xff]   ;;  %v2078_v30 = vld [vmem:[%s2798_s8 + $0x8] sm:$0xff]  }
  0xfa   :  { %v184_v32 = vsub.f32 %v173_v20, %v183_v31  ;;  %v185_v33 = vsub.f32 %v174_v22, %v183_v31  ;;  %v2079_v31 = vld [vmem:[%s2798_s8] sm:$0xff]  }
  0xfc   :  { %v186_v34 = vmul.f32 1.442695, %v184_v32  ;;  %v188_v35 = vmul.f32 1.442695, %v185_v33 }
  0xfe   :  { %2132 = vpow2.f32 %v188_v35 }
  0xff   :  { %2134 = vpow2.f32 %v186_v34 }
 0x10b   :  { %v2133_v36 = vpop.eup %2132 }
 0x10c   :  { %v2135_v37 = vpop.eup %2134  ;;  %v191_v38 = vmul.f32 %v2133_v36, %v174_v22 }
 0x10d   :  { %v2052_v39 = vpack.i.bf16 %v2133_v36, %v2135_v37  ;;  %v190_v40 = vmul.f32 %v2135_v37, %v173_v20 }
 0x10f   :  { %2053 = vrot.lane.b32.xlu0 %v2052_v39, %s2222_s4  ;;  %v1750_v39 = vld [vmem:[%s2831_s25] ss:$0 sm:$0xff] }
 0x181   :  { %v2054_v41 = vpop.permute.xlu0 %2053 }
 0x182   :  { %v2056_v42 = vunpack.i.h.bf16 %v2054_v41  ;;  %v2055_v43 = vunpack.i.l.bf16 %v2054_v41 }
 0x184   :  { %v200_v44 = vsel %vm168_vm2, %v190_v40, %v2055_v43  ;;  %v201_v45 = vsel %vm168_vm2, %v191_v38, %v2056_v42  ;;  %v1751_v43 = vld [vmem:[%s2797_s7] ss:$0 sm:$0xff] }
 0x185   :  { %v202_v46 = vpack.c.bf16 %v201_v45, %v200_v44 }
 0x187   :  { %1928 = vmatpush3.bf16.msra.mxu1 %v202_v46 }
 0x188   :  { %1933 = vmatprep.subr.bf16.mxu1 %v2220_v3 }
 0x18a   :  { %1930 = vmatmul.mubr.msk.bf16.vlgmr.msra.gmra.mxu1 %vm208_vm3, %v2400_v47 }
 0x18b   :  { %1937 = vmatprep.mubr.msk.bf16.mxu1 %vm2221_vm0, %v2220_v3  ;;  %1934 = vmatpush3.bf16.msra.mxu1 %v2074_v58 }
 0x18c   :  { %1935 = vmatprep.subr.bf16.mxu1 %v2220_v3 }
 0x18f   :  { %1936 = vmatpush3.bf16.msra.mxu1 %v2075_v60 }
 0x190   :  { %1941 = vmatprep.subr.bf16.mxu1 %v2220_v3 }
 0x24a   :  { %v246_v48 = vpop.f32.mrf.mxu1 }
 0x24b   :  { %vm253_vm4 = vcmp.gt.f32.partialorder %v246_v48, 0.0 }
 0x24c   :  { %v255_v49 = vsel %vm253_vm4, %v246_v48, 1.0  ;;  %v1931_v50 = vpop.f32.mrf.mxu1 }
 0x24d   :  { %2136 = vrcp.f32 %v255_v49 }
 0x24e   :  { %v249_v51 = vpop.f32.mrf.mxu1 }
 0x24f   :  { %vm254_vm5 = vcmp.gt.f32.partialorder %v249_v51, 0.0 }
 0x250   :  { %v256_v52 = vsel %vm254_vm5, %v249_v51, 1.0  ;;  %v1932_v53 = vpop.f32.mrf.mxu1 }
 0x251   :  { %2138 = vrcp.f32 %v256_v52  ;;  %v1752_v52 = vld [vmem:[%s2799_s9] ss:$0 sm:$0xff] }
 0x25a   :  { %v2137_v54 = vpop.eup %2136 }
 0x25b   :  { %261 = vrot.lane.b32.xlu0 %v2137_v54, %s2223_s5 }
 0x25e   :  { %v2139_v55 = vpop.eup %2138 }
 0x25f   :  { %263 = vrot.lane.b32.xlu1 %v2139_v55, %s2223_s5 }
 0x2cd   :  { %v262_v56 = vpop.permute.xlu0 %261 }
 0x2ce   :  { %v267_v57 = vmul.f32 %v262_v56, %v246_v48 }
 0x2d0   :  { %271 = vrot.lane.b32.xlu1 %v267_v57, %s2222_s4 }
 0x2d1   :  { %v264_v59 = vpop.permute.xlu1 %263 }
 0x2d2   :  { %v268_v61 = vmul.f32 %v264_v59, %v249_v51 }
 0x2d4   :  { %281 = vrot.lane.b32.xlu1 %v2382_v14, %s2222_s4  ;;  %273 = vrot.lane.b32.xlu0 %v268_v61, %s2222_s4 }
 0x2d8   :  { %283 = vrot.lane.b32.xlu0 %v2387_v19, %s2222_s4 }
 0x342   :  { %v272_v62 = vpop.permute.xlu1 %271 }
 0x343   :  { %v277_v1 = vsel %vm253_vm4, %v272_v62, 0.0 }
 0x346   :  { %v274_v63 = vpop.permute.xlu0 %273  ;;  %v282_v0 = vpop.permute.xlu1 %281 }
 0x347   :  { %v278_v2 = vsel %vm254_vm5, %v274_v63, 0.0  ;;  %v287_v5 = vadd.f32 %v282_v0, %v277_v1 }
 0x34a   :  { %v284_v4 = vpop.permute.xlu0 %283 }
 0x34b   :  { %v288_v6 = vadd.f32 %v284_v4, %v278_v2 }
 0x34d   :  { %v289_v7 = vpack.c.bf16 %v288_v6, %v287_v5 }
 0x34f   :  { %302 = vrot.lane.b32.xlu1 %v289_v7, %s2223_s5 }
 0x3c1   :  { %v303_v8 = vpop.permute.xlu1 %302 }
 0x3c2   :  { %1938 = vmatmul.mubr.msk.bf16.vlgmr.msra.gmra.mxu1 %vm168_vm2, %v303_v8 }
 0x3c3   :  { %1949 = vmatprep.mubr.msk.bf16.mxu1 %vm2221_vm0, %v2220_v3  ;;  %1942 = vmatpush3.bf16.msra.mxu1 %v2076_v28 }
 0x3c4   :  { %1943 = vmatprep.subr.bf16.mxu1 %v2220_v3 }
 0x3c7   :  { %1944 = vmatpush3.bf16.msra.mxu1 %v2077_v29 }
 0x3c8   :  { %1945 = vmatprep.subr.bf16.mxu1 %v2220_v3 }
 0x3cb   :  { %1946 = vmatpush3.bf16.msra.mxu1 %v2078_v30 }
 0x3cc   :  { %1947 = vmatprep.subr.bf16.mxu1 %v2220_v3 }
 0x3cf   :  { %1948 = vmatpush3.bf16.msra.mxu1 %v2079_v31 }
 0x3d0   :  { %1953 = vmatprep.subr.bf16.mxu1 %v2220_v3 }
 0x482   :  { %v353_v10 = vpop.f32.mrf.mxu1 }
 0x483   :  { %v354_v11 = vadd.f32 %v1746_v9, %v353_v10 }
 0x484   :  { %v1939_v12 = vpop.f32.mrf.mxu1 }
 0x485   :  { %v360_v13 = vsel %vm121_vm1, %v354_v11, 0.0 }
 0x486   :  { %361 = vadd.xlane.f32.xlu0 %v360_v13  ;;  %v356_v14 = vpop.f32.mrf.mxu1 }
 0x487   :  { %v357_v15 = vadd.f32 %v1746_v9, %v356_v14 }
 0x488   :  { %v1940_v16 = vpop.f32.mrf.mxu1 }
 0x489   :  { %v363_v17 = vsel %vm121_vm1, %v357_v15, 0.0 }
 0x48a   :  { %364 = vadd.xlane.f32.xlu1 %v363_v17 }
 0x50f   :  { %v362_v18 = vpop.xlane.xlu0 %361 }
 0x510   :  { %v367_v19 = vmul.f32 0.015625, %v362_v18 }
 0x512   :  { %v369_v20 = vsub.f32 %v354_v11, %v367_v19 }
 0x513   :  { %v365_v21 = vpop.xlane.xlu1 %364 }
 0x514   :  { %v368_v22 = vmul.f32 0.015625, %v365_v21  ;;  %v371_v23 = vmul.f32 %v369_v20, %v369_v20 }
 0x516   :  { %v370_v24 = vsub.f32 %v357_v15, %v368_v22  ;;  %v373_v25 = vsel %vm121_vm1, %v371_v23, 0.0 }
 0x517   :  { %374 = vadd.xlane.f32.xlu0 %v373_v25 }
 0x518   :  { %v372_v26 = vmul.f32 %v370_v24, %v370_v24 }
 0x51a   :  { %v376_v27 = vsel %vm121_vm1, %v372_v26, 0.0 }
 0x51b   :  { %377 = vadd.xlane.f32.xlu0 %v376_v27 }
 0x5a0   :  { %v375_v32 = vpop.xlane.xlu0 %374 }
 0x5a1   :  { %v379_v33 = vmul.f32 0.015625, %v375_v32 }
 0x5a3   :  { %v381_v34 = vadd.f32 1e-05, %v379_v33 }
 0x5a4   :  { %v378_v35 = vpop.xlane.xlu0 %377 }
 0x5a5   :  { %2140 = vrsqrt.f32 %v381_v34  ;;  %v380_v36 = vmul.f32 0.015625, %v378_v35  ;;  %v2080_v34 = vld [vmem:[%s2829_s24 + $0x18] sm:$0xff]  }
 0x5a6   :  { %1960 = vmatpush3.bf16.msra.mxu0 %v2080_v34 }
 0x5a7   :  { %v382_v37 = vadd.f32 1e-05, %v380_v36  ;;  %v2081_v36 = vld [vmem:[%s2829_s24 + $0x10] sm:$0xff]   ;;  %1961 = vmatprep.subr.bf16.mxu0 %v2220_v3 }
 0x5a9   :  { %2142 = vrsqrt.f32 %v382_v37 }
 0x5aa   :  { %1962 = vmatpush3.bf16.msra.mxu0 %v2081_v36 }
 0x5ab   :  { %1979 = vmatprep.subr.bf16.mxu0 %v2220_v3 }
 0x5b2   :  { %v2141_v38 = vpop.eup %2140 }
 0x5b3   :  { %v385_v40 = vmul.f32 %v2141_v38, %v369_v20 }
 0x5b5   :  { %v394_v41 = vmul.f32 %v1750_v39, %v385_v40 }
 0x5b6   :  { %v2143_v42 = vpop.eup %2142 }
 0x5b7   :  { %v386_v44 = vmul.f32 %v2143_v42, %v370_v24  ;;  %v403_v46 = vadd.f32 %v1751_v43, %v394_v41 }
 0x5b9   :  { %v395_v45 = vmul.f32 %v1750_v39, %v386_v44  ;;  %v405_v49 = vmax.f32 %v403_v46, 0.0 }
 0x5bb   :  { %v404_v48 = vadd.f32 %v1751_v43, %v395_v45 }
 0x5bd   :  { %v406_v50 = vmax.f32 %v404_v48, 0.0 }
 0x5bf   :  { %v407_v51 = vpack.c.bf16 %v406_v50, %v405_v49  ;;  %v1764_v49 = vld [vmem:[%s2830_s27 + $0x1] ss:$0 sm:$0xff] }
 0x5c1   :  { %1950 = vmatmul.mubr.msk.bf16.vlgmr.msra.gmra.mxu1 %vm121_vm1, %v407_v51 }
 0x5c2   :  { %1955 = vmatprep.mubr.msk.bf16.mxu1 %vm2221_vm0, %v2220_v3 }
 0x681   :  { %v484_v53 = vpop.f32.mrf.mxu1 }
 0x682   :  { %v2466_v54 = vadd.f32 %v1752_v52, %v484_v53 }
 0x683   :  { %v1951_v55 = vpop.f32.mrf.mxu1 }
 0x684   :  { %v502_v56 = vmax.f32 %v2466_v54, 0.0 }
 0x685   :  { %v487_v57 = vpop.f32.mrf.mxu1 }
 0x686   :  { %v2469_v58 = vadd.f32 %v1752_v52, %v487_v57  ;;  %v504_v60 = vadd.f32 1e-07, %v502_v56 }
 0x687   :  { %v1952_v59 = vpop.f32.mrf.mxu1 }
 0x688   :  { %v503_v61 = vmax.f32 %v2469_v58, 0.0  ;;  %v506_v63 = vsel %vm168_vm2, %v504_v60, -inf }
 0x68a   :  { %v505_v62 = vadd.f32 1e-07, %v503_v61 }
 0x68c   :  { %v507_v0 = vsel %vm168_vm2, %v505_v62, -inf }
 0x68d   :  { %v508_v1 = vmax.f32 %v506_v63, %v507_v0 }
 0x68f   :  { %v509_v2 = vrot.slane %v508_v1, 4 }
 0x691   :  { %v510_v4 = vmax.f32 %v508_v1, %v509_v2 }
 0x693   :  { %v511_v5 = vrot.slane %v510_v4, 2 }
 0x695   :  { %v512_v6 = vmax.f32 %v510_v4, %v511_v5 }
 0x697   :  { %v513_v7 = vrot.slane %v512_v6, 1 }
 0x699   :  { %v514_v8 = vmax.f32 %v512_v6, %v513_v7  ;;  %v2082_v7 = vld [vmem:[%s2798_s8 + $0x38] sm:$0xff]  }
 0x69b   :  { %v515_v9 = vsub.f32 %v504_v60, %v514_v8  ;;  %v516_v10 = vsub.f32 %v505_v62, %v514_v8  ;;  %v2083_v8 = vld [vmem:[%s2798_s8 + $0x30] sm:$0xff]  }
 0x69d   :  { %v517_v11 = vmul.f32 1.442695, %v515_v9  ;;  %v519_v12 = vmul.f32 1.442695, %v516_v10  ;;  %v2084_v9 = vld [vmem:[%s2798_s8 + $0x28] sm:$0xff]   ;;  %v2085_v10 = vld [vmem:[%s2798_s8 + $0x20] sm:$0xff]  }
 0x69f   :  { %2144 = vpow2.f32 %v517_v11 }
 0x6a0   :  { %2146 = vpow2.f32 %v519_v12 }
 0x6ac   :  { %v2145_v13 = vpop.eup %2144 }
 0x6ad   :  { %v2147_v14 = vpop.eup %2146  ;;  %v521_v15 = vmul.f32 %v2145_v13, %v504_v60 }
 0x6ae   :  { %v522_v16 = vmul.f32 %v2147_v14, %v505_v62  ;;  %v2057_v17 = vpack.i.bf16 %v2147_v14, %v2145_v13 }
 0x6b0   :  { %2058 = vrot.lane.b32.xlu1 %v2057_v17, %s2222_s4 }
 0x722   :  { %v2059_v18 = vpop.permute.xlu1 %2058 }
 0x723   :  { %v2061_v19 = vunpack.i.h.bf16 %v2059_v18  ;;  %v2060_v20 = vunpack.i.l.bf16 %v2059_v18  ;;  %v1769_v18 = vld [vmem:[%s2831_s25 + $0x1] ss:$0 sm:$0xff] }
 0x725   :  { %v532_v21 = vsel %vm168_vm2, %v522_v16, %v2061_v19  ;;  %v531_v22 = vsel %vm168_vm2, %v521_v15, %v2060_v20 }
 0x726   :  { %v533_v23 = vpack.c.bf16 %v532_v21, %v531_v22  ;;  %v1771_v22 = vld [vmem:[%s2797_s7 + $0x1] ss:$0 sm:$0xff] }
 0x728   :  { %1954 = vmatpush3.bf16.msra.mxu1 %v533_v23 }
 0x729   :  { %1967 = vmatprep.subr.bf16.mxu1 %v2220_v3 }
 0x72b   :  { %1956 = vmatmul.mubr.msk.bf16.vlgmr.msra.gmra.mxu1 %vm208_vm3, %v2400_v47 }
 0x72c   :  { %1975 = vmatprep.mubr.msk.bf16.mxu1 %vm2221_vm0, %v2220_v3  ;;  %1968 = vmatpush3.bf16.msra.mxu1 %v2082_v7 }
 0x72d   :  { %1969 = vmatprep.subr.bf16.mxu1 %v2220_v3 }
 0x730   :  { %1970 = vmatpush3.bf16.msra.mxu1 %v2083_v8 }
 0x731   :  { %1971 = vmatprep.subr.bf16.mxu1 %v2220_v3 }
 0x734   :  { %1972 = vmatpush3.bf16.msra.mxu1 %v2084_v9 }
 0x735   :  { %1973 = vmatprep.subr.bf16.mxu1 %v2220_v3 }
 0x738   :  { %1974 = vmatpush3.bf16.msra.mxu1 %v2085_v10 }
 0x739   :  { %1993 = vmatprep.subr.bf16.mxu1 %v2220_v3 }
 0x7eb   :  { %v568_v24 = vpop.f32.mrf.mxu1 }
 0x7ec   :  { %vm575_vm6 = vcmp.gt.f32.partialorder %v568_v24, 0.0 }
 0x7ed   :  { %v577_v25 = vsel %vm575_vm6, %v568_v24, 1.0  ;;  %v1957_v26 = vpop.f32.mrf.mxu1 }
 0x7ee   :  { %2148 = vrcp.f32 %v577_v25 }
 0x7ef   :  { %v571_v27 = vpop.f32.mrf.mxu1 }
 0x7f0   :  { %vm576_vm7 = vcmp.gt.f32.partialorder %v571_v27, 0.0 }
 0x7f1   :  { %v578_v28 = vsel %vm576_vm7, %v571_v27, 1.0  ;;  %v1958_v29 = vpop.f32.mrf.mxu1 }
 0x7f2   :  { %2150 = vrcp.f32 %v578_v28 }
 0x7fb   :  { %v2149_v30 = vpop.eup %2148 }
 0x7fc   :  { %583 = vrot.lane.b32.xlu0 %v2149_v30, %s2223_s5  ;;  %v1781_v30 = vld [vmem:[%s2799_s9 + $0x1] ss:$0 sm:$0xff] }
 0x7ff   :  { %v2151_v31 = vpop.eup %2150 }
 0x800   :  { %585 = vrot.lane.b32.xlu1 %v2151_v31, %s2223_s5 }
 0x86e   :  { %v584_v32 = vpop.permute.xlu0 %583 }
 0x86f   :  { %v589_v33 = vmul.f32 %v584_v32, %v568_v24 }
 0x871   :  { %593 = vrot.lane.b32.xlu1 %v589_v33, %s2222_s4 }
 0x872   :  { %v586_v35 = vpop.permute.xlu1 %585 }
 0x873   :  { %v590_v37 = vmul.f32 %v586_v35, %v571_v27 }
 0x875   :  { %493 = vrot.lane.b32.xlu1 %v2466_v54, %s2222_s4  ;;  %595 = vrot.lane.b32.xlu0 %v590_v37, %s2222_s4 }
 0x879   :  { %495 = vrot.lane.b32.xlu0 %v2469_v58, %s2222_s4 }
 0x8e3   :  { %v594_v38 = vpop.permute.xlu1 %593 }
 0x8e4   :  { %v599_v41 = vsel %vm575_vm6, %v594_v38, 0.0 }
 0x8e7   :  { %v596_v39 = vpop.permute.xlu0 %595  ;;  %v494_v40 = vpop.permute.xlu1 %493 }
 0x8e8   :  { %500 = vst.msk [vmem:[#allocation2] sm:$0xff] %vm499_vm8, %v494_v40  ;;  %v600_v42 = vsel %vm576_vm7, %v596_v39, 0.0  ;;  %v601_v44 = vadd.f32 %v599_v41, %v494_v40 }
 0x8eb   :  { %v496_v43 = vpop.permute.xlu0 %495 }
 0x8ec   :  { %501 = vst.msk [vmem:[#allocation2 + $0x8] sm:$0xff] %vm499_vm8, %v496_v43  ;;  %v602_v45 = vadd.f32 %v600_v42, %v496_v43 }
 0x8ee   :  { %v603_v46 = vpack.c.bf16 %v602_v45, %v601_v44 }
 0x8f0   :  { %618 = vrot.lane.b32.xlu1 %v603_v46, %s2223_s5 }
 0x962   :  { %v619_v48 = vpop.permute.xlu1 %618 }
 0x963   :  { %1964 = vmatmul.mubr.msk.bf16.vlgmr.msra.gmra.mxu0 %vm168_vm2, %v619_v48 }
 0x964   :  { %1981 = vmatprep.mubr.msk.bf16.mxu0 %vm2221_vm0, %v2220_v3 }
 0xa23   :  { %v669_v50 = vpop.f32.mrf.mxu0 }
 0xa24   :  { %v670_v51 = vadd.f32 %v1764_v49, %v669_v50 }
 0xa25   :  { %v1965_v52 = vpop.f32.mrf.mxu0 }
 0xa26   :  { %v676_v53 = vsel %vm121_vm1, %v670_v51, 0.0 }
 0xa27   :  { %677 = vadd.xlane.f32.xlu0 %v676_v53  ;;  %v672_v55 = vpop.f32.mrf.mxu0 }
 0xa28   :  { %v673_v56 = vadd.f32 %v1764_v49, %v672_v55 }
 0xa29   :  { %v1966_v57 = vpop.f32.mrf.mxu0 }
 0xa2a   :  { %v679_v59 = vsel %vm121_vm1, %v673_v56, 0.0 }
 0xa2b   :  { %680 = vadd.xlane.f32.xlu1 %v679_v59  ;;  %v1788_v59 = vld [vmem:[%s2800_s10 + $0x1] ss:$0 sm:$0xff] }
 0xab0   :  { %v678_v60 = vpop.xlane.xlu0 %677 }
 0xab1   :  { %v682_v61 = vmul.f32 0.015625, %v678_v60 }
 0xab3   :  { %v684_v62 = vsub.f32 %v670_v51, %v682_v61  ;;  %v1790_v61 = vld [vmem:[%s2801_s11 + $0x1] ss:$0 sm:$0xff] }
 0xab4   :  { %v681_v63 = vpop.xlane.xlu1 %680 }
 0xab5   :  { %v683_v0 = vmul.f32 0.015625, %v681_v63  ;;  %v686_v1 = vmul.f32 %v684_v62, %v684_v62 }
 0xab7   :  { %v685_v2 = vsub.f32 %v673_v56, %v683_v0  ;;  %v688_v4 = vsel %vm121_vm1, %v686_v1, 0.0 }
 0xab8   :  { %689 = vadd.xlane.f32.xlu0 %v688_v4 }
 0xab9   :  { %v687_v5 = vmul.f32 %v685_v2, %v685_v2 }
 0xabb   :  { %v691_v6 = vsel %vm121_vm1, %v687_v5, 0.0 }
 0xabc   :  { %692 = vadd.xlane.f32.xlu0 %v691_v6 }
 0xb41   :  { %v690_v11 = vpop.xlane.xlu0 %689 }
 0xb42   :  { %v694_v12 = vmul.f32 0.015625, %v690_v11 }
 0xb44   :  { %v696_v13 = vadd.f32 1e-05, %v694_v12 }
 0xb45   :  { %v693_v14 = vpop.xlane.xlu0 %692 }
 0xb46   :  { %2152 = vrsqrt.f32 %v696_v13  ;;  %v695_v15 = vmul.f32 0.015625, %v693_v14 }
 0xb48   :  { %v697_v16 = vadd.f32 1e-05, %v695_v15 }
 0xb4a   :  { %2154 = vrsqrt.f32 %v697_v16 }
 0xb53   :  { %v2153_v17 = vpop.eup %2152 }
 0xb54   :  { %v700_v19 = vmul.f32 %v2153_v17, %v684_v62 }
 0xb56   :  { %v710_v20 = vmul.f32 %v1769_v18, %v700_v19 }
 0xb57   :  { %v2155_v21 = vpop.eup %2154 }
 0xb58   :  { %v701_v23 = vmul.f32 %v2155_v21, %v685_v2  ;;  %v720_v25 = vadd.f32 %v1771_v22, %v710_v20 }
 0xb5a   :  { %v711_v24 = vmul.f32 %v1769_v18, %v701_v23  ;;  %v722_v27 = vmax.f32 %v720_v25, 0.0 }
 0xb5c   :  { %v721_v26 = vadd.f32 %v1771_v22, %v711_v24 }
 0xb5e   :  { %v723_v28 = vmax.f32 %v721_v26, 0.0 }
 0xb60   :  { %v724_v29 = vpack.c.bf16 %v723_v28, %v722_v27 }
 0xb62   :  { %1976 = vmatmul.mubr.msk.bf16.vlgmr.msra.gmra.mxu1 %vm121_vm1, %v724_v29 }
 0xb63   :  { %2001 = vmatprep.mubr.msk.bf16.mxu1 %vm2221_vm0, %v2220_v3 }
 0xc22   :  { %v803_v31 = vpop.f32.mrf.mxu1 }
 0xc23   :  { %v804_v32 = vadd.f32 %v1781_v30, %v803_v31 }
 0xc24   :  { %v1977_v33 = vpop.f32.mrf.mxu1 }
 0xc25   :  { %v810_v34 = vsel %vm168_vm2, %v804_v32, 0.0 }
 0xc26   :  { %811 = vadd.xlane.f32.xlu1 %v810_v34  ;;  %v806_v35 = vpop.f32.mrf.mxu1 }
 0xc27   :  { %v807_v36 = vadd.f32 %v1781_v30, %v806_v35 }
 0xc28   :  { %v1978_v37 = vpop.f32.mrf.mxu1 }
 0xc29   :  { %v813_v38 = vsel %vm168_vm2, %v807_v36, 0.0 }
 0xc2a   :  { %814 = vadd.xlane.f32.xlu0 %v813_v38 }
 0xcaf   :  { %v812_v39 = vpop.xlane.xlu1 %811 }
 0xcb0   :  { %v817_v40 = vmul.f32 0.03125, %v812_v39 }
 0xcb2   :  { %v819_v41 = vsub.f32 %v804_v32, %v817_v40 }
 0xcb3   :  { %v815_v42 = vpop.xlane.xlu0 %814 }
 0xcb4   :  { %v818_v43 = vmul.f32 0.03125, %v815_v42  ;;  %v821_v44 = vmul.f32 %v819_v41, %v819_v41 }
 0xcb6   :  { %v820_v45 = vsub.f32 %v807_v36, %v818_v43  ;;  %v823_v46 = vsel %vm168_vm2, %v821_v44, 0.0  ;;  %v2086_v44 = vld [vmem:[%s2829_s24 + $0x28] sm:$0xff]  }
 0xcb7   :  { %824 = vadd.xlane.f32.xlu1 %v823_v46  ;;  %v2087_v46 = vld [vmem:[%s2829_s24 + $0x20] sm:$0xff]  }
 0xcb8   :  { %v822_v48 = vmul.f32 %v820_v45, %v820_v45 }
 0xcba   :  { %v826_v49 = vsel %vm168_vm2, %v822_v48, 0.0 }
 0xcbb   :  { %827 = vadd.xlane.f32.xlu0 %v826_v49 }
 0xd40   :  { %v825_v50 = vpop.xlane.xlu1 %824 }
 0xd41   :  { %v829_v51 = vmul.f32 0.03125, %v825_v50 }
 0xd43   :  { %v831_v52 = vadd.f32 1e-05, %v829_v51 }
 0xd44   :  { %v828_v53 = vpop.xlane.xlu0 %827 }
 0xd45   :  { %2156 = vrsqrt.f32 %v831_v52  ;;  %v830_v55 = vmul.f32 0.03125, %v828_v53 }
 0xd47   :  { %v832_v56 = vadd.f32 1e-05, %v830_v55 }
 0xd49   :  { %2158 = vrsqrt.f32 %v832_v56 }
 0xd52   :  { %v2157_v57 = vpop.eup %2156 }
 0xd53   :  { %v835_v60 = vmul.f32 %v2157_v57, %v819_v41 }
 0xd55   :  { %v845_v62 = vmul.f32 %v1788_v59, %v835_v60 }
 0xd56   :  { %v2159_v63 = vpop.eup %2158 }
 0xd57   :  { %v855_v0 = vadd.f32 %v1790_v61, %v845_v62  ;;  %v836_v1 = vmul.f32 %v2159_v63, %v820_v45 }
 0xd59   :  { %v857_v2 = vmax.f32 %v855_v0, 0.0  ;;  %v846_v4 = vmul.f32 %v1788_v59, %v836_v1 }
 0xd5b   :  { %v2552_v5 = vadd.f32 %v857_v2, %v2466_v54  ;;  %v856_v6 = vadd.f32 %v1790_v61, %v846_v4  ;;  %v1797_v61 = vld [vmem:[%s2830_s27 + $0x2] ss:$0 sm:$0xff] }
 0xd5d   :  { %v858_v7 = vmax.f32 %v856_v6, 0.0  ;;  %v872_v8 = vmax.f32 %v2552_v5, 0.0 }
 0xd5f   :  { %v2556_v9 = vadd.f32 %v858_v7, %v2469_v58  ;;  %v874_v11 = vadd.f32 1e-07, %v872_v8 }
 0xd61   :  { %v873_v10 = vmax.f32 %v2556_v9, 0.0  ;;  %v876_v13 = vsel %vm168_vm2, %v874_v11, -inf }
 0xd63   :  { %v875_v12 = vadd.f32 1e-07, %v873_v10 }
 0xd65   :  { %v877_v14 = vsel %vm168_vm2, %v875_v12, -inf }
 0xd66   :  { %v878_v15 = vmax.f32 %v876_v13, %v877_v14 }
 0xd68   :  { %v879_v16 = vrot.slane %v878_v15, 4 }
 0xd6a   :  { %v880_v17 = vmax.f32 %v878_v15, %v879_v16 }
 0xd6c   :  { %v881_v54 = vrot.slane %v880_v17, 2 }
 0xd6e   :  { %v882_v18 = vmax.f32 %v880_v17, %v881_v54 }
 0xd70   :  { %v883_v19 = vrot.slane %v882_v18, 1 }
 0xd72   :  { %v884_v20 = vmax.f32 %v882_v18, %v883_v19  ;;  %v2088_v18 = vld [vmem:[%s2798_s8 + $0x58] sm:$0xff]   ;;  %v2089_v19 = vld [vmem:[%s2798_s8 + $0x50] sm:$0xff]  }
 0xd73   :  { %1994 = vmatpush3.bf16.msra.mxu1 %v2088_v18 }
 0xd74   :  { %v885_v21 = vsub.f32 %v874_v11, %v884_v20  ;;  %v886_v22 = vsub.f32 %v875_v12, %v884_v20  ;;  %1995 = vmatprep.subr.bf16.mxu1 %v2220_v3  ;;  %v2090_v20 = vld [vmem:[%s2798_s8 + $0x48] sm:$0xff]  }
 0xd76   :  { %v887_v23 = vmul.f32 1.442695, %v885_v21  ;;  %v889_v58 = vmul.f32 1.442695, %v886_v22  ;;  %v2091_v21 = vld [vmem:[%s2798_s8 + $0x40] sm:$0xff]  }
 0xd77   :  { %1996 = vmatpush3.bf16.msra.mxu1 %v2089_v19 }
 0xd78   :  { %2160 = vpow2.f32 %v887_v23  ;;  %1997 = vmatprep.subr.bf16.mxu1 %v2220_v3 }
 0xd79   :  { %2162 = vpow2.f32 %v889_v58 }
 0xd7b   :  { %1998 = vmatpush3.bf16.msra.mxu1 %v2090_v20  ;;  %v2099_v20 = vld [vmem:[%s2802_s12] sm:$0xff]  }
 0xd7c   :  { %1999 = vmatprep.subr.bf16.mxu1 %v2220_v3 }
 0xd7f   :  { %2000 = vmatpush3.bf16.msra.mxu1 %v2091_v21 }
 0xd85   :  { %v2161_v24 = vpop.eup %2160 }
 0xd86   :  { %v2163_v25 = vpop.eup %2162  ;;  %v891_v26 = vmul.f32 %v2161_v24, %v874_v11 }
 0xd87   :  { %v2062_v27 = vpack.i.bf16 %v2163_v25, %v2161_v24  ;;  %v892_v28 = vmul.f32 %v2163_v25, %v875_v12 }
 0xd89   :  { %2063 = vrot.lane.b32.xlu1 %v2062_v27, %s2222_s4 }
 0xdfb   :  { %v2064_v29 = vpop.permute.xlu1 %2063 }
 0xdfc   :  { %v2066_v30 = vunpack.i.h.bf16 %v2064_v29  ;;  %v2065_v31 = vunpack.i.l.bf16 %v2064_v29 }
 0xdfe   :  { %v902_v32 = vsel %vm168_vm2, %v892_v28, %v2066_v30  ;;  %v901_v33 = vsel %vm168_vm2, %v891_v26, %v2065_v31  ;;  %v1802_v28 = vld [vmem:[%s2831_s25 + $0x2] ss:$0 sm:$0xff] }
 0xdff   :  { %v903_v34 = vpack.c.bf16 %v902_v32, %v901_v33  ;;  %v1804_v32 = vld [vmem:[%s2797_s7 + $0x2] ss:$0 sm:$0xff]  ;;  %s2224_s7 = smov 64  }
 0xe01   :  { %1980 = vmatpush3.bf16.msra.mxu0 %v903_v34 }
 0xe02   :  { %1985 = vmatprep.subr.bf16.mxu0 %v2220_v3 }
 0xe04   :  { %1982 = vmatmul.mubr.msk.bf16.vlgmr.msra.gmra.mxu0 %vm208_vm3, %v2400_v47 }
 0xe05   :  { %1989 = vmatprep.mubr.msk.bf16.mxu0 %vm2221_vm0, %v2220_v3  ;;  %1986 = vmatpush3.bf16.msra.mxu0 %v2086_v44 }
 0xe06   :  { %1987 = vmatprep.subr.bf16.mxu0 %v2220_v3 }
 0xe09   :  { %1988 = vmatpush3.bf16.msra.mxu0 %v2087_v46 }
 0xe0a   :  { %2005 = vmatprep.subr.bf16.mxu0 %v2220_v3 }
 0xec4   :  { %v938_v35 = vpop.f32.mrf.mxu0 }
 0xec5   :  { %vm945_vm9 = vcmp.gt.f32.partialorder %v938_v35, 0.0 }
 0xec6   :  { %v947_v36 = vsel %vm945_vm9, %v938_v35, 1.0  ;;  %v1983_v37 = vpop.f32.mrf.mxu0 }
 0xec7   :  { %2164 = vrcp.f32 %v947_v36 }
 0xec8   :  { %v941_v38 = vpop.f32.mrf.mxu0 }
 0xec9   :  { %vm946_vm10 = vcmp.gt.f32.partialorder %v941_v38, 0.0 }
 0xeca   :  { %v948_v39 = vsel %vm946_vm10, %v941_v38, 1.0  ;;  %v1984_v40 = vpop.f32.mrf.mxu0 }
 0xecb   :  { %2166 = vrcp.f32 %v948_v39  ;;  %v1814_v40 = vld [vmem:[%s2799_s9 + $0x2] ss:$0 sm:$0xff] }
 0xed4   :  { %v2165_v41 = vpop.eup %2164 }
 0xed5   :  { %953 = vrot.lane.b32.xlu0 %v2165_v41, %s2223_s5 }
 0xed8   :  { %v2167_v42 = vpop.eup %2166 }
 0xed9   :  { %955 = vrot.lane.b32.xlu1 %v2167_v42, %s2223_s5 }
 0xf47   :  { %v954_v47 = vpop.permute.xlu0 %953 }
 0xf48   :  { %v959_v43 = vmul.f32 %v954_v47, %v938_v35 }
 0xf4a   :  { %963 = vrot.lane.b32.xlu1 %v959_v43, %s2222_s4 }
 0xf4b   :  { %v956_v45 = vpop.permute.xlu1 %955 }
 0xf4c   :  { %v960_v48 = vmul.f32 %v956_v45, %v941_v38 }
 0xf4e   :  { %971 = vrot.lane.b32.xlu1 %v2552_v5, %s2222_s4  ;;  %965 = vrot.lane.b32.xlu0 %v960_v48, %s2222_s4 }
 0xf52   :  { %973 = vrot.lane.b32.xlu0 %v2556_v9, %s2222_s4 }
 0xfbc   :  { %v964_v49 = vpop.permute.xlu1 %963 }
 0xfbd   :  { %v969_v52 = vsel %vm945_vm9, %v964_v49, 0.0 }
 0xfc0   :  { %v966_v50 = vpop.permute.xlu0 %965  ;;  %v972_v51 = vpop.permute.xlu1 %971 }
 0xfc1   :  { %v970_v53 = vsel %vm946_vm10, %v966_v50, 0.0  ;;  %v977_v56 = vadd.f32 %v972_v51, %v969_v52 }
 0xfc4   :  { %v974_v55 = vpop.permute.xlu0 %973 }
 0xfc5   :  { %v978_v57 = vadd.f32 %v974_v55, %v970_v53 }
 0xfc7   :  { %v979_v59 = vpack.c.bf16 %v978_v57, %v977_v56 }
 0xfc9   :  { %994 = vrot.lane.b32.xlu1 %v979_v59, %s2223_s5 }
0x103b   :  { %v995_v60 = vpop.permute.xlu1 %994 }
0x103c   :  { %1990 = vmatmul.mubr.msk.bf16.vlgmr.msra.gmra.mxu0 %vm168_vm2, %v995_v60 }
0x103d   :  { %2021 = vmatprep.mubr.msk.bf16.mxu0 %vm2221_vm0, %v2220_v3 }
0x10fc   :  { %v1045_v62 = vpop.f32.mrf.mxu0 }
0x10fd   :  { %v1046_v63 = vadd.f32 %v1797_v61, %v1045_v62  ;;  %v2093_v62 = vld [vmem:[%s2802_s12 + $0x30] sm:$0xff]  }
0x10fe   :  { %v1991_v0 = vpop.f32.mrf.mxu0 }
0x10ff   :  { %v1052_v1 = vsel %vm121_vm1, %v1046_v63, 0.0  ;;  %v2095_v0 = vld [vmem:[%s2802_s12 + $0x20] sm:$0xff]  }
0x1100   :  { %1053 = vadd.xlane.f32.xlu0 %v1052_v1  ;;  %v1048_v2 = vpop.f32.mrf.mxu0  ;;  %v2096_v1 = vld [vmem:[%s2802_s12 + $0x18] sm:$0xff]  }
0x1101   :  { %v1049_v4 = vadd.f32 %v1797_v61, %v1048_v2  ;;  %v2092_v61 = vld [vmem:[%s2802_s12 + $0x38] sm:$0xff]  }
0x1102   :  { %v1992_v6 = vpop.f32.mrf.mxu0  ;;  %2006 = vmatpush3.bf16.msra.mxu0 %v2092_v61 }
0x1103   :  { %v1055_v7 = vsel %vm121_vm1, %v1049_v4, 0.0  ;;  %2007 = vmatprep.subr.bf16.mxu0 %v2220_v3 }
0x1104   :  { %1056 = vadd.xlane.f32.xlu1 %v1055_v7 }
0x1106   :  { %2008 = vmatpush3.bf16.msra.mxu0 %v2093_v62 }
0x1107   :  { %2009 = vmatprep.subr.bf16.mxu0 %v2220_v3 }
0x1189   :  { %v1054_v8 = vpop.xlane.xlu0 %1053 }
0x118a   :  { %v1058_v10 = vmul.f32 0.015625, %v1054_v8 }
0x118c   :  { %v1060_v11 = vsub.f32 %v1046_v63, %v1058_v10  ;;  %v2094_v63 = vld [vmem:[%s2802_s12 + $0x28] sm:$0xff]  }
0x118d   :  { %v1057_v12 = vpop.xlane.xlu1 %1056  ;;  %2010 = vmatpush3.bf16.msra.mxu0 %v2094_v63  ;;  %v1381_v63 = vld [vmem:[%s2805_s15] sm:$0x3] }
0x118e   :  { %v1059_v13 = vmul.f32 0.015625, %v1057_v12  ;;  %v1062_v14 = vmul.f32 %v1060_v11, %v1060_v11  ;;  %2011 = vmatprep.subr.bf16.mxu0 %v2220_v3 }
0x1190   :  { %v1061_v15 = vsub.f32 %v1049_v4, %v1059_v13  ;;  %v1064_v16 = vsel %vm121_vm1, %v1062_v14, 0.0  ;;  %v2097_v13 = vld [vmem:[%s2802_s12 + $0x10] sm:$0xff]  }
0x1191   :  { %1065 = vadd.xlane.f32.xlu0 %v1064_v16  ;;  %2012 = vmatpush3.bf16.msra.mxu0 %v2095_v0 }
0x1192   :  { %v1063_v17 = vmul.f32 %v1061_v15, %v1061_v15  ;;  %2013 = vmatprep.subr.bf16.mxu0 %v2220_v3 }
0x1194   :  { %v1067_v54 = vsel %vm121_vm1, %v1063_v17, 0.0  ;;  %v1823_v17 = vld [vmem:[%s2801_s11 + $0x2] ss:$0 sm:$0xff] }
0x1195   :  { %1068 = vadd.xlane.f32.xlu0 %v1067_v54  ;;  %2014 = vmatpush3.bf16.msra.mxu0 %v2096_v1  ;;  %v2098_v54 = vld [vmem:[%s2802_s12 + $0x8] sm:$0xff]  }
0x1196   :  { %2015 = vmatprep.subr.bf16.mxu0 %v2220_v3 }
0x1199   :  { %2016 = vmatpush3.bf16.msra.mxu0 %v2097_v13 }
0x119a   :  { %2017 = vmatprep.subr.bf16.mxu0 %v2220_v3 }
0x119d   :  { %2018 = vmatpush3.bf16.msra.mxu0 %v2098_v54 }
0x119e   :  { %2019 = vmatprep.subr.bf16.mxu0 %v2220_v3 }
0x11a1   :  { %2020 = vmatpush3.bf16.msra.mxu0 %v2099_v20 }
0x11a2   :  { %2025 = vmatprep.subr.bf16.mxu0 %v2220_v3 }
0x121a   :  { %v1066_v22 = vpop.xlane.xlu0 %1065 }
0x121b   :  { %v1070_v23 = vmul.f32 0.015625, %v1066_v22 }
0x121d   :  { %v1072_v58 = vadd.f32 1e-05, %v1070_v23 }
0x121e   :  { %v1069_v24 = vpop.xlane.xlu0 %1068 }
0x121f   :  { %2168 = vrsqrt.f32 %v1072_v58  ;;  %v1071_v25 = vmul.f32 0.015625, %v1069_v24 }
0x1221   :  { %v1073_v26 = vadd.f32 1e-05, %v1071_v25 }
0x1223   :  { %2170 = vrsqrt.f32 %v1073_v26 }
0x122c   :  { %v2169_v27 = vpop.eup %2168 }
0x122d   :  { %v1076_v29 = vmul.f32 %v2169_v27, %v1060_v11  ;;  %v2100_v27 = vld [vmem:[%s2804_s14 + $0x70] ss:$8 sps:$4 sm:$0xff]  }
0x122f   :  { %v1086_v30 = vmul.f32 %v1802_v28, %v1076_v29 }
0x1230   :  { %v2171_v31 = vpop.eup %2170 }
0x1231   :  { %v1077_v33 = vmul.f32 %v2171_v31, %v1061_v15  ;;  %v1096_v35 = vadd.f32 %v1804_v32, %v1086_v30  ;;  %v1821_v15 = vld [vmem:[%s2800_s10 + $0x2] ss:$0 sm:$0xff]  ;;  %v2108_v31 = vld [vmem:[%s2804_s14 + $0x54] ss:$8 sps:$4 sm:$0xff]  }
0x1232   :  { %v2103_v30 = vld [vmem:[%s2804_s14 + $0x60] ss:$8 sps:$4 sm:$0xff]  }
0x1233   :  { %v1087_v34 = vmul.f32 %v1802_v28, %v1077_v33  ;;  %v1098_v37 = vmax.f32 %v1096_v35, 0.0  ;;  %v2102_v28 = vld [vmem:[%s2804_s14 + $0x74] ss:$8 sps:$4 sm:$0xff]   ;;  %v2109_v33 = vld [vmem:[%s2804_s14 + $0x40] ss:$8 sps:$4 sm:$0xff]  }
0x1234   :  { %1473 = vmatprep.subr.bf16.mxu1 %v2102_v28  ;;  %v2112_v35 = vld [vmem:[%s2804_s14 + $0x30] ss:$8 sps:$4 sm:$0xff]  }
0x1235   :  { %v1097_v36 = vadd.f32 %v1804_v32, %v1087_v34  ;;  %v2111_v32 = vld [vmem:[%s2804_s14 + $0x44] ss:$8 sps:$4 sm:$0xff]   ;;  %v2114_v34 = vld [vmem:[%s2804_s14 + $0x34] ss:$8 sps:$4 sm:$0xff]  }
0x1236   :  { %v2125_v28 = vld [vmem:[%s2808_s18 + $0x30] sm:$0xff]  }
0x1237   :  { %v1099_v38 = vmax.f32 %v1097_v36, 0.0  ;;  %v2117_v36 = vld [vmem:[%s2804_s14 + $0x24] ss:$8 sps:$4 sm:$0xff]  }
0x1239   :  { %v1100_v39 = vpack.c.bf16 %v1099_v38, %v1098_v37  ;;  %v2115_v37 = vld [vmem:[%s2804_s14 + $0x20] ss:$8 sps:$4 sm:$0xff]  }
0x123b   :  { %2002 = vmatmul.mubr.msk.bf16.vlgmr.msra.gmra.mxu1 %vm121_vm1, %v1100_v39 }
0x123c   :  { %1474 = vmatpush1.bf16.msra.mxu1 %v2100_v27  ;;  %v2124_v27 = vld [vmem:[%s2808_s18 + $0x38] sm:$0xff]  }
0x12fb   :  { %v1179_v41 = vpop.f32.mrf.mxu1 }
0x12fc   :  { %v1180_v42 = vadd.f32 %v1814_v40, %v1179_v41 }
0x12fd   :  { %v2003_v47 = vpop.f32.mrf.mxu1 }
0x12fe   :  { %v1186_v43 = vsel %vm168_vm2, %v1180_v42, 0.0  ;;  %v2120_v47 = vld [vmem:[%s2804_s14 + $0x14] ss:$8 sps:$4 sm:$0xff]  }
0x12ff   :  { %1187 = vadd.xlane.f32.xlu1 %v1186_v43  ;;  %v1182_v44 = vpop.f32.mrf.mxu1  ;;  %v2118_v43 = vld [vmem:[%s2804_s14 + $0x10] ss:$8 sps:$4 sm:$0xff]  }
0x1300   :  { %v1183_v45 = vadd.f32 %v1814_v40, %v1182_v44  ;;  %v2123_v44 = vld [vmem:[%s2804_s14 + $0x4] ss:$8 sps:$4 sm:$0xff]  }
0x1301   :  { %v2004_v46 = vpop.f32.mrf.mxu1 }
0x1302   :  { %v1189_v48 = vsel %vm168_vm2, %v1183_v45, 0.0  ;;  %v2225_v46 = vmov 0  }
0x1303   :  { %1190 = vadd.xlane.f32.xlu0 %v1189_v48  ;;  %1505 = vmatprep.mubr.bf16.mxu1 %v2225_v46  ;;  %v1824_v48 = vld [vmem:[%s2803_s13] ss:$0 sm:$0xff] }
0x1304   :  { %2068 = vset.pattern.permute.xlu1 %v2225_v46  ;;  %2067 = vset.pattern.permute.xlu0 %v2225_v46 }
0x1388   :  { %v1188_v49 = vpop.xlane.xlu1 %1187 }
0x1389   :  { %v1192_v50 = vmul.f32 0.03125, %v1188_v49 }
0x138b   :  { %v1194_v51 = vsub.f32 %v1180_v42, %v1192_v50 }
0x138c   :  { %v1191_v52 = vpop.xlane.xlu0 %1190 }
0x138d   :  { %v1193_v53 = vmul.f32 0.03125, %v1191_v52  ;;  %v1196_v55 = vmul.f32 %v1194_v51, %v1194_v51 }
0x138f   :  { %v1195_v56 = vsub.f32 %v1183_v45, %v1193_v53  ;;  %v1198_v57 = vsel %vm168_vm2, %v1196_v55, 0.0  ;;  %v2121_v45 = vld [vmem:[%s2804_s14] ss:$8 sps:$4 sm:$0xff]  }
0x1390   :  { %1199 = vadd.xlane.f32.xlu1 %v1198_v57 }
0x1391   :  { %v1197_v59 = vmul.f32 %v1195_v56, %v1195_v56 }
0x1393   :  { %v1201_v60 = vsel %vm168_vm2, %v1197_v59, 0.0 }
0x1394   :  { %1202 = vadd.xlane.f32.xlu0 %v1201_v60  ;;  %v1383_v60 = vlaneseq }
0x1396   :  { %v1384_v61 = vshrl.u32 %v1383_v60, 7 }
0x1398   :  { %v1389_v62 = vsub.s32 1, %v1384_v61 }
0x139a   :  { %v1390_v0 = vrot.slane %v1381_v63, %v1389_v62 }
0x13a1   :  { %863 = vrot.lane.b32.xlu1 %v2552_v5, %s2224_s7 }
0x13aa   :  { %865 = vrot.lane.b32.xlu0 %v2556_v9, %s2224_s7 }
0x1419   :  { %v1200_v2 = vpop.xlane.xlu1 %1199 }
0x141a   :  { %v1204_v4 = vmul.f32 0.03125, %v1200_v2 }
0x141c   :  { %v1206_v6 = vadd.f32 1e-05, %v1204_v4 }
0x141d   :  { %v864_v7 = vpop.permute.xlu1 %863  ;;  %v1203_v8 = vpop.xlane.xlu0 %1202 }
0x141e   :  { %2172 = vrsqrt.f32 %v1206_v6  ;;  %870 = vst.msk [vmem:[#allocation2] sm:$0xff] %vm869_vm11, %v864_v7  ;;  %v1205_v10 = vmul.f32 0.03125, %v1203_v8 }
0x1420   :  { %v1207_v11 = vadd.f32 1e-05, %v1205_v10 }
0x1421   :  { %v866_v12 = vpop.permute.xlu0 %865 }
0x1422   :  { %2174 = vrsqrt.f32 %v1207_v11  ;;  %871 = vst.msk [vmem:[#allocation2 + $0x8] sm:$0xff] %vm869_vm11, %v866_v12  ;;  %v1385_v12 = vsub.s32 0, %v1384_v61 }
0x1424   :  { %v1386_v13 = vrot.slane %v1381_v63, %v1385_v12 }
0x142b   :  { %v2173_v14 = vpop.eup %2172 }
0x142c   :  { %v1210_v16 = vmul.f32 %v2173_v14, %v1194_v51 }
0x142e   :  { %v1220_v18 = vmul.f32 %v1821_v15, %v1210_v16 }
0x142f   :  { %v2175_v19 = vpop.eup %2174 }
0x1430   :  { %v1230_v21 = vadd.f32 %v1823_v17, %v1220_v18  ;;  %v1211_v22 = vmul.f32 %v2175_v19, %v1195_v56 }
0x1432   :  { %v1232_v23 = vmax.f32 %v1230_v21, 0.0  ;;  %v1221_v58 = vmul.f32 %v1821_v15, %v1211_v22  ;;  %v1851_v21 = vld [vmem:[%s2806_s16] ss:$0 sm:$0xff] }
0x1434   :  { %v1234_v24 = vadd.f32 %v1232_v23, %v2552_v5  ;;  %v1231_v25 = vadd.f32 %v1823_v17, %v1221_v58  ;;  %v2105_v5 = vld [vmem:[%s2804_s14 + $0x64] ss:$8 sps:$4 sm:$0xff]  }
0x1435   :  { %1475 = vmatprep.subr.bf16.mxu1 %v2105_v5  ;;  %v2127_v5 = vld [vmem:[%s2808_s18 + $0x20] sm:$0xff]  }
0x1436   :  { %1238 = vrot.lane.b32.xlu1 %v1234_v24, %s2223_s5  ;;  %v1233_v26 = vmax.f32 %v1231_v25, 0.0  ;;  %1476 = vmatpush1.bf16.msra.mxu1 %v2103_v30  ;;  %v1852_v30 = vld [vmem:[#allocation3] ss:$0 sm:$0xff] }
0x1437   :  { %1477 = vmatprep.subr.bf16.mxu1 %v2108_v31 }
0x1438   :  { %v1235_v29 = vadd.f32 %v1233_v26, %v2556_v9  ;;  %v2106_v9 = vld [vmem:[%s2804_s14 + $0x50] ss:$8 sps:$4 sm:$0xff]  }
0x143a   :  { %1240 = vrot.lane.b32.xlu1 %v1235_v29, %s2223_s5  ;;  %1478 = vmatpush1.bf16.msra.mxu1 %v2106_v9  ;;  %v2126_v29 = vld [vmem:[%s2808_s18 + $0x28] sm:$0xff]  }
0x143b   :  { %1479 = vmatprep.subr.bf16.mxu1 %v2111_v32 }
0x143e   :  { %1480 = vmatpush1.bf16.msra.mxu1 %v2109_v33 }
0x143f   :  { %1481 = vmatprep.subr.bf16.mxu1 %v2114_v34 }
0x1442   :  { %1482 = vmatpush1.bf16.msra.mxu1 %v2112_v35 }
0x1443   :  { %1483 = vmatprep.subr.bf16.mxu1 %v2117_v36 }
0x1446   :  { %1484 = vmatpush1.bf16.msra.mxu1 %v2115_v37 }
0x1447   :  { %1485 = vmatprep.subr.bf16.mxu1 %v2120_v47 }
0x144a   :  { %1486 = vmatpush1.bf16.msra.mxu1 %v2118_v43 }
0x144b   :  { %1487 = vmatprep.subr.bf16.mxu1 %v2123_v44 }
0x144e   :  { %1488 = vmatpush1.bf16.msra.mxu1 %v2121_v45 }
0x14a8   :  { %v1239_v38 = vpop.permute.xlu1 %1238 }
0x14a9   :  { %1245 = vst.msk [vmem:[#allocation2] sm:$0xff] %vm1244_vm12, %v1239_v38 }
0x14ac   :  { %v1241_v39 = vpop.permute.xlu1 %1240 }
0x14ad   :  { %1246 = vst.msk [vmem:[#allocation2 + $0x8] sm:$0xff] %vm1244_vm12, %v1241_v39 }
0x14b0   :  { %v1247_v40 = vld [vmem:[#allocation2] sm:$0xff] }
0x14b4   :  { %v1248_v41 = vld [vmem:[#allocation2 + $0x8] sm:$0xff] }
0x14b5   :  { %v1249_v42 = vpack.c.bf16 %v1248_v41, %v1247_v40 }
0x14b7   :  { %2022 = vmatmul.mubr.bf16.vlgmr.msra.gmra.mxu0 %v1249_v42 }
0x14b8   :  { %2041 = vmatprep.mubr.msk.bf16.mxu0 %vm2221_vm0, %v2220_v3  ;;  %2026 = vmatpush3.bf16.msra.mxu0 %v2124_v27 }
0x14b9   :  { %2027 = vmatprep.subr.bf16.mxu0 %v2220_v3 }
0x14bc   :  { %2028 = vmatpush3.bf16.msra.mxu0 %v2125_v28 }
0x14bd   :  { %2029 = vmatprep.subr.bf16.mxu0 %v2220_v3 }
0x14c0   :  { %2030 = vmatpush3.bf16.msra.mxu0 %v2126_v29 }
0x14c1   :  { %2031 = vmatprep.subr.bf16.mxu0 %v2220_v3 }
0x14c4   :  { %2032 = vmatpush3.bf16.msra.mxu0 %v2127_v5 }
0x14c5   :  { %2033 = vmatprep.subr.bf16.mxu0 %v2220_v3 }
0x1577   :  { %v1355_v49 = vpop.f32.mrf.mxu0 }
0x1578   :  { %v2726_v51 = vadd.f32 %v1824_v48, %v1355_v49 }
0x1579   :  { %v2023_v50 = vpop.f32.mrf.mxu0 }
0x157a   :  { %v1362_v56 = vmax.f32 %v2726_v51, 0.0  ;;  %v1708_v51 = vld [vmem:[%s2810_s20] sm:$0x1] }
0x157b   :  { %v1358_v52 = vpop.f32.mrf.mxu0 }
0x157c   :  { %v2728_v53 = vadd.f32 %v1824_v48, %v1358_v52 }
0x157d   :  { %v2024_v55 = vpop.f32.mrf.mxu0 }
0x157e   :  { %v1363_v57 = vmax.f32 %v2728_v53, 0.0 }
0x1580   :  { %v1364_v59 = vpack.c.bf16 %v1363_v57, %v1362_v56 }
0x1582   :  { %1506 = vmatmul.mubr.bf16.vlgmr.msra.gmra.mxu1 %v1364_v59 }
0x1642   :  { %v1507_v1 = vpop.f32.mrf.mxu1 }
0x1643   :  { %v1508_v14 = vadd.f32 %v1507_v1, %v1386_v13  ;;  %v2128_v1 = vld [vmem:[%s2808_s18 + $0x18] sm:$0xff]  }
0x1644   :  { %v1509_v2 = vpop.f32.mrf.mxu1  ;;  %2034 = vmatpush3.bf16.msra.mxu0 %v2128_v1 }
0x1645   :  { %v1510_v4 = vadd.f32 %v1509_v2, %v1390_v0  ;;  %2035 = vmatprep.subr.bf16.mxu0 %v2220_v3 }
0x1646   :  { %v1511_v6 = vpop.f32.mrf.mxu1 }
0x1647   :  { %v1849_v7 = vmul.f32 -1.442695, %v1510_v4  ;;  %v1512_v17 = vadd.f32 %v1511_v6, %v1386_v13  ;;  %v2129_v6 = vld [vmem:[%s2808_s18 + $0x10] sm:$0xff]  }
0x1648   :  { %v1513_v8 = vpop.f32.mrf.mxu1  ;;  %2036 = vmatpush3.bf16.msra.mxu0 %v2129_v6 }
0x1649   :  { %2176 = vpow2.f32 %v1849_v7  ;;  %v1514_v10 = vadd.f32 %v1513_v8, %v1390_v0  ;;  %2037 = vmatprep.subr.bf16.mxu0 %v2220_v3  ;;  %v2130_v7 = vld [vmem:[%s2808_s18 + $0x8] sm:$0xff]   ;;  %v2131_v8 = vld [vmem:[%s2808_s18] sm:$0xff]  }
0x164b   :  { %v1850_v11 = vmul.f32 -1.442695, %v1514_v10 }
0x164c   :  { %2038 = vmatpush3.bf16.msra.mxu0 %v2130_v7 }
0x164d   :  { %2178 = vpow2.f32 %v1850_v11  ;;  %2039 = vmatprep.subr.bf16.mxu0 %v2220_v3 }
0x164e   :  { %2180 = vtanh.f32 %v1508_v14 }
0x1650   :  { %2040 = vmatpush3.bf16.msra.mxu0 %v2131_v8 }
0x1656   :  { %v2177_v15 = vpop.eup %2176 }
0x1657   :  { %v1524_v16 = vadd.f32 1.0, %v2177_v15 }
0x1659   :  { %2182 = vrcp.f32 %v1524_v16 }
0x165a   :  { %v2179_v54 = vpop.eup %2178  ;;  %2184 = vtanh.f32 %v1512_v17 }
0x165b   :  { %v1525_v18 = vadd.f32 1.0, %v2179_v54  ;;  %v2181_v19 = vpop.eup %2180 }
0x165d   :  { %2186 = vrcp.f32 %v1525_v18 }
0x1666   :  { %v2183_v20 = vpop.eup %2182 }
0x1667   :  { %v1530_v22 = vmul.f32 %v2183_v20, %v2181_v19  ;;  %v2185_v23 = vpop.eup %2184  ;;  %v1618_v20 = vld [vmem:[%s2809_s19] sm:$0x1]  ;;  %s2226_s19 = smov [#allocation5]  }
0x1668   :  { %s1730_s1 = sshll.u32 %s2226_s19, 4  ;;  %s1731_s1 = int_to_ptr.vmem [resolvable:$true] %s1730_s1 }
0x1669   :  { %v1539_v58 = vmul.f32 %v1851_v21, %v1530_v22  ;;  %s2198_s20 = scalar_lea.vmem %s1731_s1, 16  ;;  %s2202_s17 = scalar_lea.vmem %s1731_s1, 32 }
0x166a   :  { %v2187_v24 = vpop.eup %2186  ;;  %p2199_p0 = scmp.ne.s32.totalorder %s1731_s1, %s2198_s20  ;;  %p2203_p1 = scmp.lt.s32.totalorder %s1731_s1, %s1731_s1 }
0x166b   :  { %1541 = vadd.xlane.f32.xlu0 %v1539_v58  ;;  %v1531_v25 = vmul.f32 %v2187_v24, %v2185_v23  ;;  %p2204_p2 = scmp.lt.s32.totalorder %s2202_s17, %s2198_s20 }
0x166d   :  { %v1540_v26 = vmul.f32 %v1851_v21, %v1531_v25  ;;  %v1714_v25 = vld [vmem:[#allocation4] sm:$0x1]  ;;  %p2205_p3 = por %p2204_p2, %p2203_p1 }
0x166f   :  { %1543 = vadd.xlane.f32.xlu1 %v1540_v26  ;;  %p2206_p4 = pnand %p2205_p3, %p2199_p0 }
0x16f4   :  { %v1542_v31 = vpop.xlane.xlu0 %1541 }
0x16f5   :  { %v1552_v9 = vadd.f32 %v1852_v30, %v1542_v31 }
0x16f7   :  { %v1555_v34 = vsel %vm1554_vm13, %v1552_v9, -inf }
0x16f8   :  { %v1544_v32 = vpop.xlane.xlu1 %1543 }
0x16f9   :  { %v1553_v33 = vadd.f32 %v1852_v30, %v1544_v32 }
0x16fb   :  { %v1556_v35 = vsel %vm1554_vm13, %v1553_v33, -inf }
0x16fc   :  { %v1557_v36 = vmax.f32 %v1555_v34, %v1556_v35 }
0x16fe   :  { %v1558_v37 = vrot.slane %v1557_v36, 4 }
0x1700   :  { %v1559_v38 = vmax.f32 %v1557_v36, %v1558_v37 }
0x1702   :  { %v1560_v39 = vrot.slane %v1559_v38, 2 }
0x1704   :  { %v1561_v40 = vmax.f32 %v1559_v38, %v1560_v39 }
0x1706   :  { %v1562_v41 = vrot.slane %v1561_v40, 1 }
0x1708   :  { %v1563_v42 = vmax.f32 %v1561_v40, %v1562_v41 }
0x170a   :  { %v1564_v47 = vsub.f32 %v1552_v9, %v1563_v42  ;;  %v1565_v43 = vsub.f32 %v1553_v33, %v1563_v42 }
0x170c   :  { %v1566_v44 = vmul.f32 1.442695, %v1564_v47  ;;  %v1568_v45 = vmul.f32 1.442695, %v1565_v43 }
0x170e   :  { %2188 = vpow2.f32 %v1566_v44 }
0x170f   :  { %2190 = vpow2.f32 %v1568_v45 }
0x171b   :  { %v2189_v46 = vpop.eup %2188 }
0x171c   :  { %v2191_v48 = vpop.eup %2190  ;;  %v1570_v49 = vsel %vm1554_vm13, %v2189_v46, 0.0 }
0x171d   :  { %v1571_v50 = vsel %vm1554_vm13, %v2191_v48, 0.0 }
0x171e   :  { %v1572_v52 = vadd.f32 %v1571_v50, %v1570_v49 }
0x1720   :  { %v1573_v55 = vrot.slane %v1572_v52, 4 }
0x1722   :  { %v1574_v59 = vadd.f32 %v1573_v55, %v1572_v52 }
0x1724   :  { %v1575_v60 = vrot.slane %v1574_v59, 2 }
0x1726   :  { %v1576_v61 = vadd.f32 %v1575_v60, %v1574_v59 }
0x1728   :  { %v1577_v62 = vrot.slane %v1576_v61, 1 }
0x172a   :  { %v1578_v63 = vadd.f32 %v1577_v62, %v1576_v61 }
0x172c   :  { %2192 = vrcp.f32 %v1578_v63 }
0x1739   :  { %v2193_v0 = vpop.eup %2192 }
0x173a   :  { %v1581_v2 = vmul.f32 %v2193_v0, %v2191_v48  ;;  %v1580_v4 = vmul.f32 %v2193_v0, %v2189_v46 }
0x173c   :  { %1589 = vperm.xlu1 %2068, %v1581_v2   ;;  %1584 = vperm.xlu0 %2067, %v1580_v4  }
0x17b7   :  { %v1590_v10 = vpop.permute.xlu1 %1589  ;;  %v1585_v11 = vpop.permute.xlu0 %1584 }
0x17b8   :  { %v1593_v12 = vmul.f32 %v1590_v10, %v1363_v57  ;;  %v1592_v13 = vmul.f32 %v1585_v11, %v1362_v56 }
0x17ba   :  { %v1594_v14 = vadd.f32 %v1593_v12, %v1592_v13 }
0x17bc   :  { %v1595_v15 = vrot.slane %v1594_v14, 4 }
0x17be   :  { %v1596_v16 = vadd.f32 %v1595_v15, %v1594_v14 }
0x17c0   :  { %v1597_v17 = vrot.slane %v1596_v16, 2 }
0x17c2   :  { %v1598_v54 = vadd.f32 %v1597_v17, %v1596_v16 }
0x17c4   :  { %v1599_v18 = vrot.slane %v1598_v54, 1 }
0x17c6   :  { %v1600_v3 = vadd.f32 %v1599_v18, %v1598_v54 }
0x17c8   :  { %v1601_v19 = vpack.c.bf16 %v1600_v3, %v1600_v3 }
0x17ca   :  { %2042 = vmatmul.mubr.bf16.vlgmr.msra.gmra.mxu0 %v1601_v19 }
0x188a   :  { %v1701_v21 = vpop.f32.mrf.mxu0 }
0x188b   :  { %v1702_v22 = vadd.f32 %v1701_v21, %v1618_v20 }
0x188c   :  { %v2043_v53 = vpop.f32.mrf.mxu0 }
0x188d   :  { %v1707_v56 = vmax.f32 %v1702_v22, 0.0 }
0x188e   :  { %v1704_v57 = vpop.f32.mrf.mxu0 }
0x188f   :  { %v1709_v23 = vmul.f32 %v1708_v51, %v1707_v56 }
0x1890   :  { %v2044_v58 = vpop.f32.mrf.mxu0 }
0x1891   :  { %v1711_v24 = vsel %vm1710_vm14, %v1709_v23, 0.0 }
0x1892   :  { %1712 = vadd.xlane.f32.xlu1 %v1711_v24 }
0x191b   :  { %v1713_v26 = vpop.xlane.xlu1 %1712 }
0x191c   :  { %v1715_v27 = vadd.f32 %v1714_v25, %v1713_v26 }
0x191e   :  { %v1861_v28 = vmul.f32 -1.442695, %v1715_v27 }
0x1920   :  { %2194 = vpow2.f32 %v1861_v28 }
0x192d   :  { %v2195_v29 = vpop.eup %2194 }
0x192e   :  { %v1719_v5 = vadd.f32 1.0, %v2195_v29 }
0x1930   :  { %2196 = vrcp.f32 %v1719_v5 }
0x193d   :  { %v2197_v30 = vpop.eup %2196 }
0x193e   :  { %1723 = vst.msk [vmem:[#allocation5] sm:$0x1] %vm1722_vm15, %v2197_v30 }
0x193f   :  { %2209 = shalt.err (!%p2206_p4)
}
0x1940   :  { %1733 = dma.vmem_to_hbm [thread:$0]  %s1731_s1, 16, %s2811_s22, [#allocation6]  }
0x1941   :  { %2218 = dma.done.wait [#allocation6], 16  }
0x1942   :  { %2219 = vsyncadd [#allocation6], 4294967280 }
0x1943   :  { %1737 = vsyncpa [#allocation6], 1 }

</bundles_post_ra>
